<compile_context>
chip_gen: v5e
topology: v5e:2x2
jax: 0.10.0
libtpu: 0.0.40
codegen_flags: <defaults>
</compile_context>

<pallas_src>
import jax
import jax.numpy as jnp
from jax import lax
from jax.experimental import pallas as pl
from jax.experimental.pallas import tpu as pltpu

LN_EPS = 1e-5

_SHIFT_MODE = None  # "roll_pos" | "roll_neg" | "concat"


def _detect_shift_mode():
    """Probe pltpu.roll's direction once (cached). We need result[r] = x[r - s]."""
    global _SHIFT_MODE
    if _SHIFT_MODE is not None:
        return _SHIFT_MODE
    try:
        def probe(x_ref, o_ref):
            o_ref[...] = pltpu.roll(x_ref[...], shift=1, axis=0)

        x = jnp.broadcast_to(jnp.arange(32, dtype=jnp.float32)[:, None], (32, 8))
        y = pl.pallas_call(
            probe, out_shape=jax.ShapeDtypeStruct((32, 8), jnp.float32))(x)
        if float(y[1, 0]) == 0.0:        # y[r] = x[r-1]  (jnp.roll convention)
            _SHIFT_MODE = "roll_pos"
        elif float(y[31, 0]) == 0.0:     # y[r] = x[r+1]  (opposite convention)
            _SHIFT_MODE = "roll_neg"
        else:
            _SHIFT_MODE = "concat"
    except Exception:
        # roll not usable here (or we're under jit): use the explicit-shift fallback.
        return "concat"
    return _SHIFT_MODE


def _detect_num_tensorcores():
    """Heuristic: v7x-style parts expose 2 TensorCores per chip; others 1."""
    try:
        kind = jax.devices()[0].device_kind.lower()
    except Exception:
        return 1
    return 2 if "v7" in kind else 1


def _make_kernel(T, K, Cin, Cout, F, has_proj, ln_eps, mm_dtype, shift_mode):
    """Kernel body. Row blocks hold F whole frames of T steps (rows = F*T)."""

    def shift_down(v, s, rows):
        # Want w[r] = v[r - s]; rows with row_t < s are masked by the caller, which
        # also covers any wrap-around rows.
        if shift_mode == "roll_pos":
            return pltpu.roll(v, shift=s, axis=0)
        if shift_mode == "roll_neg":
            return pltpu.roll(v, shift=rows - s, axis=0)
        # Fallback: explicit zero-pad + crop (materializes a copy, still correct).
        return jnp.concatenate(
            [jnp.zeros((s, v.shape[1]), v.dtype), v[: rows - s, :]], axis=0)

    def kernel(*refs):
        if has_proj:
            (x_ref, sc_ref, sh_ref, w1_ref, b1_ref, g_ref, beta_ref, w2_ref,
             wp_ref, o_ref) = refs
        else:
            (x_ref, sc_ref, sh_ref, w1_ref, b1_ref, g_ref, beta_ref, w2_ref,
             o_ref) = refs
            wp_ref = None

        rows = o_ref.shape[0]
        # time index within each frame (blocks always start at a frame boundary)
        row_t = lax.broadcasted_iota(jnp.int32, (rows, 1), 0) % T

        def causal_conv(v, w_ref):
            # v: (rows, C) activations; w_ref: (K, C, Cout).
            # Tap with causal look-back s multiplies weight slab w_ref[K-1-s].
            acc = jnp.dot(v.astype(mm_dtype), w_ref[K - 1],
                          preferred_element_type=jnp.float32)          # s = 0
            for s in range(1, K):
                vs = jnp.where(row_t >= s, shift_down(v, s, rows), 0.0)
                acc += jnp.dot(vs.astype(mm_dtype), w_ref[K - 1 - s],
                               preferred_element_type=jnp.float32)
            return acc

        x = x_ref[...]                                                  # (rows, Cin)

        # --- conv1 (+bias) then SiLU ---
        h = causal_conv(x, w1_ref) + b1_ref[...]
        h = h * jax.nn.sigmoid(h)

        # --- LayerNorm over channels (lanes) ---
        mu = jnp.mean(h, axis=-1, keepdims=True)
        var = jnp.mean(jnp.square(h - mu), axis=-1, keepdims=True)
        h = (h - mu) * lax.rsqrt(var + ln_eps) * g_ref[...] + beta_ref[...]

        # --- conv2 (its bias is folded into the FiLM shift by the wrapper) ---
        out = causal_conv(h, w2_ref)

        # --- FiLM: per-frame (scale, shift) broadcast over that frame's T rows ---
        def per_frame(ref):
            slabs = [jnp.broadcast_to(ref[f], (T, Cout)) for f in range(F)]
            return slabs[0] if F == 1 else jnp.concatenate(slabs, axis=0)
        out = out * per_frame(sc_ref) + per_frame(sh_ref)

        # --- residual (projection bias already folded into shift) ---
        if has_proj:
            out = out + jnp.dot(x.astype(mm_dtype), wp_ref[...],
                                preferred_element_type=jnp.float32)
        else:
            out = out + x
        o_ref[...] = out

    return kernel


def residual_block_pallas(x_nct, time_emb, p, *, ln_eps=LN_EPS,
                          matmul_dtype=jnp.float32, max_rows_per_block=1024):
    """x_nct: (B, dim_in, T); time_emb: (B, time_dim) or None. Returns (B, dim_out, T).

    matmul_dtype=jnp.bfloat16 feeds the MXU bf16 operands (recommended on v6e/v7x);
    accumulation and all elementwise math remain f32.
    """
    B, Cin, T = x_nct.shape
    Cout, _, K = p["w1"].shape
    has_proj = (Cin != Cout)
    f32 = jnp.float32
    mmdt = matmul_dtype

    # channels-last rows (B-major, time fastest) - matches kernel's row_t = iota % T
    x_rows = jnp.transpose(x_nct, (0, 2, 1)).astype(f32).reshape(B * T, Cin)

    # FiLM MLP hoisted out of the kernel (one batched matmul); "+1" folded into the
    # scale; conv2 bias b2 (and the projection bias bp) folded into the shift.
    b2 = p["b2"].astype(f32)
    if time_emb is not None:
        te = jax.nn.silu(time_emb.astype(f32))
        m = te @ p["wm"].astype(f32).T + p["bm"].astype(f32)
        scale = m[:, :Cout] + 1.0
        shift = m[:, Cout:] + b2 * scale
    else:
        scale = jnp.ones((B, Cout), f32)
        shift = jnp.broadcast_to(b2, (B, Cout))
    if has_proj:
        shift = shift + p["bp"].astype(f32)[None, :]
    scale3 = scale[:, None, :]     # (B, 1, Cout): block's last two dims == full dims
    shift3 = shift[:, None, :]

    # conv weights as (K, Cin/out, Cout); tap j multiplies x[t - (K-1-j)]
    w1 = jnp.transpose(p["w1"].astype(f32), (2, 1, 0)).astype(mmdt)   # (K, Cin, Cout)
    w2 = jnp.transpose(p["w2"].astype(f32), (2, 1, 0)).astype(mmdt)   # (K, Cout, Cout)
    b1 = p["b1"].astype(f32).reshape(1, Cout)
    g = p["gamma"].astype(f32).reshape(1, Cout)
    beta = p["beta"].astype(f32).reshape(1, Cout)

    # --- grid: whole frames per block, capped block size, >=2 blocks on 2-TC chips.
    R = B * T
    n_tc = _detect_num_tensorcores()
    want = max(n_tc, (R + max_rows_per_block - 1) // max_rows_per_block)
    n_blocks = B
    for d in range(1, B + 1):
        if B % d == 0 and d >= want:
            n_blocks = d
            break
    F = B // n_blocks              # frames per block
    rb = F * T                     # rows per block (always whole frames)
    if n_blocks > 1 and rb % 8 != 0:
        n_blocks, F, rb = 1, B, R  # sublane alignment fallback
    assert rb % T == 0 and rb * n_blocks == R

    def row_spec(c):
        return pl.BlockSpec((rb, c), lambda i: (i, 0))

    def full2(shape):
        return pl.BlockSpec(shape, lambda i: (0, 0))

    def full3(shape):
        return pl.BlockSpec(shape, lambda i: (0, 0, 0))

    in_specs = [
        row_spec(Cin),                                     # x rows
        pl.BlockSpec((F, 1, Cout), lambda i: (i, 0, 0)),   # FiLM scale (per frame)
        pl.BlockSpec((F, 1, Cout), lambda i: (i, 0, 0)),   # FiLM shift (b2/bp folded)
        full3((K, Cin, Cout)),                             # conv1 weight
        full2((1, Cout)),                                  # b1
        full2((1, Cout)),                                  # gamma
        full2((1, Cout)),                                  # beta
        full3((K, Cout, Cout)),                            # conv2 weight
    ]
    args = [x_rows, scale3, shift3, w1, b1, g, beta, w2]
    if has_proj:
        wp = p["wp"].astype(f32)[:, :, 0].T.astype(mmdt)   # (Cin, Cout)
        in_specs.append(full2((Cin, Cout)))
        args.append(wp)

    out_flat = pl.pallas_call(
        _make_kernel(T, K, Cin, Cout, F, has_proj, ln_eps, mmdt,
                     _detect_shift_mode()),
        grid=(n_blocks,),
        in_specs=in_specs,
        out_specs=row_spec(Cout),
        out_shape=jax.ShapeDtypeStruct((R, Cout), f32),
        compiler_params=pltpu.CompilerParams(dimension_semantics=("parallel",)),
    )(*args)

    return jnp.transpose(out_flat.reshape(B, T, Cout), (0, 2, 1))    # (B, Cout, T)


def ref_residual_block(x, temb, p):
    """Pure-JAX reference in PyTorch layout (NCT)."""
    def tconv(h, W, b):
        Kk = W.shape[-1]
        Tn = h.shape[-1]
        hp = jnp.pad(h, ((0, 0), (0, 0), (Kk - 1, 0)))
        out = b[None, :, None]
        for j in range(Kk):
            out = out + jnp.einsum("oc,bct->bot", W[:, :, j], hp[:, :, j:j + Tn])
        return out

    Cout = p["b1"].shape[0]
    h = tconv(x, p["w1"], p["b1"])
    h = jax.nn.silu(h)
    mu = h.mean(axis=1, keepdims=True)
    var = ((h - mu) ** 2).mean(axis=1, keepdims=True)
    h = (h - mu) / jnp.sqrt(var + LN_EPS) * p["gamma"][None, :, None] + p["beta"][None, :, None]
    out = tconv(h, p["w2"], p["b2"])
    if temb is not None:
        m = jax.nn.silu(temb) @ p["wm"].T + p["bm"]
        scale, shift = m[:, :Cout], m[:, Cout:]
        out = out * (scale[:, :, None] + 1.0) + shift[:, :, None]
    if "wp" in p:
        res = jnp.einsum("oc,bct->bot", p["wp"][:, :, 0], x) + p["bp"][None, :, None]
    else:
        res = x
    return out + res


def _make_params(Cin, Cout, TIME, ks):
    p = {
        "w1": 0.2 * jax.random.normal(ks[0], (Cout, Cin, 3), jnp.float32),
        "b1": 0.1 * jax.random.normal(ks[1], (Cout,), jnp.float32),
        "gamma": 1.0 + 0.1 * jax.random.normal(ks[2], (Cout,), jnp.float32),
        "beta": 0.1 * jax.random.normal(ks[3], (Cout,), jnp.float32),
        "w2": 0.2 * jax.random.normal(ks[4], (Cout, Cout, 3), jnp.float32),
        "b2": 0.1 * jax.random.normal(ks[5], (Cout,), jnp.float32),
        "wm": 0.1 * jax.random.normal(ks[6], (2 * Cout, TIME), jnp.float32),
        "bm": 0.1 * jax.random.normal(ks[7], (2 * Cout,), jnp.float32),
    }
    if Cin != Cout:
        p["wp"] = 0.2 * jax.random.normal(ks[8], (Cout, Cin, 1), jnp.float32),
    if Cin != Cout:
        p["wp"] = 0.2 * jax.random.normal(ks[8], (Cout, Cin, 1), jnp.float32)
        p["bp"] = 0.1 * jax.random.normal(ks[9], (Cout,), jnp.float32)
    return p


if __name__ == "__main__":
    # keep XLA-side matmuls (reference + wrapper FiLM) at full f32 precision
    jax.config.update("jax_default_matmul_precision", "highest")

    # --- case 1: dim_in != dim_out (Conv1d(1) residual projection), time cond. on ---
    B, Cin, Cout, T, TIME = 2, 4, 8, 16, 32
    ks = jax.random.split(jax.random.PRNGKey(0), 12)
    p = _make_params(Cin, Cout, TIME, ks)
    x = jax.random.normal(ks[10], (B, Cin, T), jnp.float32)
    temb = jax.random.normal(ks[11], (B, TIME), jnp.float32)

    out = jax.block_until_ready(residual_block_pallas(x, temb, p))
    ref = ref_residual_block(x, temb, p)
    assert out.shape == (B, Cout, T)
    if not jnp.allclose(out, ref, atol=1e-3, rtol=1e-3):
        raise AssertionError(
            f"case1 mismatch vs reference, max abs err = {float(jnp.max(jnp.abs(out - ref)))}")

    # --- case 2: dim_in == dim_out (Identity residual) ---
    ks2 = jax.random.split(jax.random.PRNGKey(1), 12)
    p2 = _make_params(Cout, Cout, TIME, ks2)
    x2 = jax.random.normal(ks2[10], (B, Cout, T), jnp.float32)
    temb2 = jax.random.normal(ks2[11], (B, TIME), jnp.float32)

    out2 = jax.block_until_ready(residual_block_pallas(x2, temb2, p2))
    ref2 = ref_residual_block(x2, temb2, p2)
    if not jnp.allclose(out2, ref2, atol=1e-3, rtol=1e-3):
        raise AssertionError(
            f"case2 mismatch vs reference, max abs err = {float(jnp.max(jnp.abs(out2 - ref2)))}")

    # --- case 3: bf16 MXU operands (v6e/v7x recommendation), f32 accumulate/elementwise ---
    out3 = jax.block_until_ready(
        residual_block_pallas(x, temb, p, matmul_dtype=jnp.bfloat16))
    if not jnp.allclose(out3, ref, atol=2e-2, rtol=2e-2):
        raise AssertionError(
            f"case3 (bf16 matmul) mismatch, max abs err = {float(jnp.max(jnp.abs(out3 - ref)))}")

    print("KERNEL_OK")
</pallas_src>

<mosaic_0001>
module attributes {stable_mosaic.version = 11 : i64} {
  func.func @probe(%arg0: memref<32x8xf32, #tpu.memory_space<vmem>>, %arg1: memref<32x8xf32, #tpu.memory_space<vmem>>) attributes {dimension_semantics = [], scalar_prefetch = 0 : i64, scratch_operands = 0 : i64, tpu.core_type = #tpu.core_type<tc>} {
    %c0 = arith.constant 0 : index
    %c0_0 = arith.constant 0 : index
    %0 = vector.load %arg0[%c0, %c0_0] : memref<32x8xf32, #tpu.memory_space<vmem>>, vector<32x8xf32>
    %c1_i32 = arith.constant 1 : i32
    %1 = tpu.dynamic_rotate %0 by %c1_i32 dim 0 : vector<32x8xf32>, i32 -> vector<32x8xf32>
    %c0_1 = arith.constant 0 : index
    %c0_2 = arith.constant 0 : index
    %2 = vector.load %arg1[%c0_1, %c0_2] : memref<32x8xf32, #tpu.memory_space<vmem>>, vector<32x8xf32>
    tpu.vector_store %arg1[%c0_1, %c0_2], %1 {strides = array<i32>} : memref<32x8xf32, #tpu.memory_space<vmem>>, vector<32x8xf32>,
    return
  }
}

module attributes {stable_mosaic.version = 11 : i64} {
  func.func @kernel(%arg0: i32, %arg1: memref<32x4xf32, #tpu.memory_space<vmem>>, %arg2: memref<2x1x8xf32, #tpu.memory_space<vmem>>, %arg3: memref<2x1x8xf32, #tpu.memory_space<vmem>>, %arg4: memref<3x4x8xf32, #tpu.memory_space<vmem>>, %arg5: memref<1x8xf32, #tpu.memory_space<vmem>>, %arg6: memref<1x8xf32, #tpu.memory_space<vmem>>, %arg7: memref<1x8xf32, #tpu.memory_space<vmem>>, %arg8: memref<3x8x8xf32, #tpu.memory_space<vmem>>, %arg9: memref<4x8xf32, #tpu.memory_space<vmem>>, %arg10: memref<32x8xf32, #tpu.memory_space<vmem>>) attributes {dimension_semantics = [#tpu.dimension_semantics<parallel>], iteration_bounds = array<i64: 1>, scalar_prefetch = 0 : i64, scratch_operands = 0 : i64, tpu.core_type = #tpu.core_type<tc>, window_params = [{transform_indices = @transform_0, window_bounds = array<i64: 32, 4>}, {transform_indices = @transform_1, window_bounds = array<i64: 2, 1, 8>}, {transform_indices = @transform_2, window_bounds = array<i64: 2, 1, 8>}, {pipeline_mode = #tpu.pipeline_mode<synchronous>, transform_indices = @transform_3, window_bounds = array<i64: 3, 4, 8>}, {pipeline_mode = #tpu.pipeline_mode<synchronous>, transform_indices = @transform_4, window_bounds = array<i64: 1, 8>}, {pipeline_mode = #tpu.pipeline_mode<synchronous>, transform_indices = @transform_5, window_bounds = array<i64: 1, 8>}, {pipeline_mode = #tpu.pipeline_mode<synchronous>, transform_indices = @transform_6, window_bounds = array<i64: 1, 8>}, {pipeline_mode = #tpu.pipeline_mode<synchronous>, transform_indices = @transform_7, window_bounds = array<i64: 3, 8, 8>}, {pipeline_mode = #tpu.pipeline_mode<synchronous>, transform_indices = @transform_8, window_bounds = array<i64: 4, 8>}, {transform_indices = @transform_9, window_bounds = array<i64: 32, 8>}]} {
    %0 = tpu.iota {dimensions = array<i32: 0>} : vector<32x1xi32>
    %c16_i32 = arith.constant 16 : i32
    %c0_i32 = arith.constant 0 : i32
    %1 = arith.cmpi eq, %c16_i32, %c0_i32 : i32
    %c1_i32 = arith.constant 1 : i32
    %2 = arith.select %1, %c1_i32, %c16_i32 : i32
    %3 = vector.broadcast %2 : i32 to vector<32x1xi32>
    %4 = arith.remsi %0, %3 : vector<32x1xi32>
    %c0_i32_0 = arith.constant 0 : i32
    %5 = vector.broadcast %c0_i32_0 : i32 to vector<32x1xi32>
    %6 = arith.cmpi ne, %4, %5 : vector<32x1xi32>
    %c0_i32_1 = arith.constant 0 : i32
    %7 = vector.broadcast %c0_i32_1 : i32 to vector<32x1xi32>
    %8 = arith.cmpi slt, %4, %7 : vector<32x1xi32>
    %c0_i32_2 = arith.constant 0 : i32
    %9 = arith.cmpi slt, %2, %c0_i32_2 : i32
    %10 = vector.broadcast %9 : i1 to vector<32x1xi1>
    %11 = vector.broadcast %10 : vector<32x1xi1> to vector<32x1xi1>
    %12 = arith.xori %8, %11 : vector<32x1xi1>
    %13 = arith.andi %12, %6 : vector<32x1xi1>
    %14 = vector.broadcast %2 : i32 to vector<32x1xi32>
    %15 = arith.addi %4, %14 : vector<32x1xi32>
    %16 = arith.select %13, %15, %4 : vector<32x1xi1>, vector<32x1xi32>
    %c0 = arith.constant 0 : index
    %c0_3 = arith.constant 0 : index
    %17 = vector.load %arg1[%c0, %c0_3] : memref<32x4xf32, #tpu.memory_space<vmem>>, vector<32x4xf32>
    %c2 = arith.constant 2 : index
    %c0_4 = arith.constant 0 : index
    %c0_5 = arith.constant 0 : index
    %18 = vector.load %arg4[%c2, %c0_4, %c0_5] : memref<3x4x8xf32, #tpu.memory_space<vmem>>, vector<1x4x8xf32>
    %19 = vector.shape_cast %18 : vector<1x4x8xf32> to vector<4x8xf32>
    %cst = arith.constant dense<0.000000e+00> : vector<32x8xf32>
    %20 = tpu.matmul %17, %19, %cst {dimension_numbers = #tpu.dot_dimension_numbers<[1], [0], [0], [1], [0, 0, 1, 1], [], []>, precision = #tpu.contract_precision<fp32>} : vector<32x4xf32>, vector<4x8xf32>, vector<32x8xf32> -> vector<32x8xf32>
    %c1_i32_6 = arith.constant 1 : i32
    %21 = vector.broadcast %c1_i32_6 : i32 to vector<32x1xi32>
    %22 = arith.cmpi sge, %16, %21 : vector<32x1xi32>
    %cst_7 = arith.constant 0.000000e+00 : f32
    %23 = vector.broadcast %cst_7 : f32 to vector<1x4xf32>
    %24 = vector.extract_strided_slice %17 {offsets = [0, 0], sizes = [31, 4], strides = [1, 1]} : vector<32x4xf32> to vector<31x4xf32>
    %25 = tpu.concatenate %23, %24 in 0 : vector<1x4xf32>, vector<31x4xf32> -> vector<32x4xf32>
    %cst_8 = arith.constant 0.000000e+00 : f32
    %26 = vector.shape_cast %22 : vector<32x1xi1> to vector<32x1xi1>
    %27 = vector.broadcast %26 : vector<32x1xi1> to vector<32x4xi1>
    %28 = vector.broadcast %cst_8 : f32 to vector<32x4xf32>
    %29 = arith.select %27, %25, %28 : vector<32x4xi1>, vector<32x4xf32>
    %c1 = arith.constant 1 : index
    %c0_9 = arith.constant 0 : index
    %c0_10 = arith.constant 0 : index
    %30 = vector.load %arg4[%c1, %c0_9, %c0_10] : memref<3x4x8xf32, #tpu.memory_space<vmem>>, vector<1x4x8xf32>
    %31 = vector.shape_cast %30 : vector<1x4x8xf32> to vector<4x8xf32>
    %cst_11 = arith.constant dense<0.000000e+00> : vector<32x8xf32>
    %32 = tpu.matmul %29, %31, %cst_11 {dimension_numbers = #tpu.dot_dimension_numbers<[1], [0], [0], [1], [0, 0, 1, 1], [], []>, precision = #tpu.contract_precision<fp32>} : vector<32x4xf32>, vector<4x8xf32>, vector<32x8xf32> -> vector<32x8xf32>
    %33 = arith.addf %20, %32 : vector<32x8xf32>
    %c2_i32 = arith.constant 2 : i32
    %34 = vector.broadcast %c2_i32 : i32 to vector<32x1xi32>
    %35 = arith.cmpi sge, %16, %34 : vector<32x1xi32>
    %cst_12 = arith.constant 0.000000e+00 : f32
    %36 = vector.broadcast %cst_12 : f32 to vector<2x4xf32>
    %37 = vector.extract_strided_slice %17 {offsets = [0, 0], sizes = [30, 4], strides = [1, 1]} : vector<32x4xf32> to vector<30x4xf32>
    %38 = tpu.concatenate %36, %37 in 0 : vector<2x4xf32>, vector<30x4xf32> -> vector<32x4xf32>
    %cst_13 = arith.constant 0.000000e+00 : f32
    %39 = vector.shape_cast %35 : vector<32x1xi1> to vector<32x1xi1>
    %40 = vector.broadcast %39 : vector<32x1xi1> to vector<32x4xi1>
    %41 = vector.broadcast %cst_13 : f32 to vector<32x4xf32>
    %42 = arith.select %40, %38, %41 : vector<32x4xi1>, vector<32x4xf32>
    %c0_14 = arith.constant 0 : index
    %c0_15 = arith.constant 0 : index
    %c0_16 = arith.constant 0 : index
    %43 = vector.load %arg4[%c0_14, %c0_15, %c0_16] : memref<3x4x8xf32, #tpu.memory_space<vmem>>, vector<1x4x8xf32>
    %44 = vector.shape_cast %43 : vector<1x4x8xf32> to vector<4x8xf32>
    %cst_17 = arith.constant dense<0.000000e+00> : vector<32x8xf32>
    %45 = tpu.matmul %42, %44, %cst_17 {dimension_numbers = #tpu.dot_dimension_numbers<[1], [0], [0], [1], [0, 0, 1, 1], [], []>, precision = #tpu.contract_precision<fp32>} : vector<32x4xf32>, vector<4x8xf32>, vector<32x8xf32> -> vector<32x8xf32>
    %46 = arith.addf %33, %45 : vector<32x8xf32>
    %c0_18 = arith.constant 0 : index
    %c0_19 = arith.constant 0 : index
    %47 = vector.load %arg5[%c0_18, %c0_19] : memref<1x8xf32, #tpu.memory_space<vmem>>, vector<1x8xf32>
    %48 = vector.broadcast %47 : vector<1x8xf32> to vector<32x8xf32>
    %49 = arith.addf %46, %48 : vector<32x8xf32>
    %50 = arith.negf %49 : vector<32x8xf32>
    %51 = math.exp %50 : vector<32x8xf32>
    %cst_20 = arith.constant 1.000000e+00 : f32
    %52 = vector.broadcast %cst_20 : f32 to vector<32x8xf32>
    %53 = arith.addf %52, %51 : vector<32x8xf32>
    %54 = arith.divf %52, %53 : vector<32x8xf32>
    %55 = arith.mulf %49, %54 : vector<32x8xf32>
    %cst_21 = arith.constant dense<0.000000e+00> : vector<32xf32>
    %56 = vector.multi_reduction <add>, %55, %cst_21 [1] : vector<32x8xf32> to vector<32xf32>
    %57 = vector.shape_cast %56 : vector<32xf32> to vector<32x1xf32>
    %cst_22 = arith.constant 8.000000e+00 : f32
    %58 = vector.broadcast %cst_22 : f32 to vector<32x1xf32>
    %59 = arith.divf %57, %58 : vector<32x1xf32>
    %60 = vector.broadcast %59 : vector<32x1xf32> to vector<32x8xf32>
    %61 = arith.subf %55, %60 : vector<32x8xf32>
    %62 = arith.mulf %61, %61 : vector<32x8xf32>
    %cst_23 = arith.constant dense<0.000000e+00> : vector<32xf32>
    %63 = vector.multi_reduction <add>, %62, %cst_23 [1] : vector<32x8xf32> to vector<32xf32>
    %64 = vector.shape_cast %63 : vector<32xf32> to vector<32x1xf32>
    %cst_24 = arith.constant 8.000000e+00 : f32
    %65 = vector.broadcast %cst_24 : f32 to vector<32x1xf32>
    %66 = arith.divf %64, %65 : vector<32x1xf32>
    %67 = vector.broadcast %59 : vector<32x1xf32> to vector<32x8xf32>
    %68 = arith.subf %55, %67 : vector<32x8xf32>
    %cst_25 = arith.constant 9.99999974E-6 : f32
    %69 = vector.broadcast %cst_25 : f32 to vector<32x1xf32>
    %70 = arith.addf %66, %69 : vector<32x1xf32>
    %71 = math.rsqrt %70 : vector<32x1xf32>
    %72 = vector.broadcast %71 : vector<32x1xf32> to vector<32x8xf32>
    %73 = arith.mulf %68, %72 : vector<32x8xf32>
    %c0_26 = arith.constant 0 : index
    %c0_27 = arith.constant 0 : index
    %74 = vector.load %arg6[%c0_26, %c0_27] : memref<1x8xf32, #tpu.memory_space<vmem>>, vector<1x8xf32>
    %75 = vector.broadcast %74 : vector<1x8xf32> to vector<32x8xf32>
    %76 = arith.mulf %73, %75 : vector<32x8xf32>
    %c0_28 = arith.constant 0 : index
    %c0_29 = arith.constant 0 : index
    %77 = vector.load %arg7[%c0_28, %c0_29] : memref<1x8xf32, #tpu.memory_space<vmem>>, vector<1x8xf32>
    %78 = vector.broadcast %77 : vector<1x8xf32> to vector<32x8xf32>
    %79 = arith.addf %76, %78 : vector<32x8xf32>
    %c2_30 = arith.constant 2 : index
    %c0_31 = arith.constant 0 : index
    %c0_32 = arith.constant 0 : index
    %80 = vector.load %arg8[%c2_30, %c0_31, %c0_32] : memref<3x8x8xf32, #tpu.memory_space<vmem>>, vector<1x8x8xf32>
    %81 = vector.shape_cast %80 : vector<1x8x8xf32> to vector<8x8xf32>
    %cst_33 = arith.constant dense<0.000000e+00> : vector<32x8xf32>
    %82 = tpu.matmul %79, %81, %cst_33 {dimension_numbers = #tpu.dot_dimension_numbers<[1], [0], [0], [1], [0, 0, 1, 1], [], []>, precision = #tpu.contract_precision<fp32>} : vector<32x8xf32>, vector<8x8xf32>, vector<32x8xf32> -> vector<32x8xf32>
    %c1_i32_34 = arith.constant 1 : i32
    %83 = vector.broadcast %c1_i32_34 : i32 to vector<32x1xi32>
    %84 = arith.cmpi sge, %16, %83 : vector<32x1xi32>
    %cst_35 = arith.constant 0.000000e+00 : f32
    %85 = vector.broadcast %cst_35 : f32 to vector<1x8xf32>
    %86 = vector.extract_strided_slice %79 {offsets = [0, 0], sizes = [31, 8], strides = [1, 1]} : vector<32x8xf32> to vector<31x8xf32>
    %87 = tpu.concatenate %85, %86 in 0 : vector<1x8xf32>, vector<31x8xf32> -> vector<32x8xf32>
    %cst_36 = arith.constant 0.000000e+00 : f32
    %88 = vector.shape_cast %84 : vector<32x1xi1> to vector<32x1xi1>
    %89 = vector.broadcast %88 : vector<32x1xi1> to vector<32x8xi1>
    %90 = vector.broadcast %cst_36 : f32 to vector<32x8xf32>
    %91 = arith.select %89, %87, %90 : vector<32x8xi1>, vector<32x8xf32>
    %c1_37 = arith.constant 1 : index
    %c0_38 = arith.constant 0 : index
    %c0_39 = arith.constant 0 : index
    %92 = vector.load %arg8[%c1_37, %c0_38, %c0_39] : memref<3x8x8xf32, #tpu.memory_space<vmem>>, vector<1x8x8xf32>
    %93 = vector.shape_cast %92 : vector<1x8x8xf32> to vector<8x8xf32>
    %cst_40 = arith.constant dense<0.000000e+00> : vector<32x8xf32>
    %94 = tpu.matmul %91, %93, %cst_40 {dimension_numbers = #tpu.dot_dimension_numbers<[1], [0], [0], [1], [0, 0, 1, 1], [], []>, precision = #tpu.contract_precision<fp32>} : vector<32x8xf32>, vector<8x8xf32>, vector<32x8xf32> -> vector<32x8xf32>
    %95 = arith.addf %82, %94 : vector<32x8xf32>
    %c2_i32_41 = arith.constant 2 : i32
    %96 = vector.broadcast %c2_i32_41 : i32 to vector<32x1xi32>
    %97 = arith.cmpi sge, %16, %96 : vector<32x1xi32>
    %cst_42 = arith.constant 0.000000e+00 : f32
    %98 = vector.broadcast %cst_42 : f32 to vector<2x8xf32>
    %99 = vector.extract_strided_slice %79 {offsets = [0, 0], sizes = [30, 8], strides = [1, 1]} : vector<32x8xf32> to vector<30x8xf32>
    %100 = tpu.concatenate %98, %99 in 0 : vector<2x8xf32>, vector<30x8xf32> -> vector<32x8xf32>
    %cst_43 = arith.constant 0.000000e+00 : f32
    %101 = vector.shape_cast %97 : vector<32x1xi1> to vector<32x1xi1>
    %102 = vector.broadcast %101 : vector<32x1xi1> to vector<32x8xi1>
    %103 = vector.broadcast %cst_43 : f32 to vector<32x8xf32>
    %104 = arith.select %102, %100, %103 : vector<32x8xi1>, vector<32x8xf32>
    %c0_44 = arith.constant 0 : index
    %c0_45 = arith.constant 0 : index
    %c0_46 = arith.constant 0 : index
    %105 = vector.load %arg8[%c0_44, %c0_45, %c0_46] : memref<3x8x8xf32, #tpu.memory_space<vmem>>, vector<1x8x8xf32>
    %106 = vector.shape_cast %105 : vector<1x8x8xf32> to vector<8x8xf32>
    %cst_47 = arith.constant dense<0.000000e+00> : vector<32x8xf32>
    %107 = tpu.matmul %104, %106, %cst_47 {dimension_numbers = #tpu.dot_dimension_numbers<[1], [0], [0], [1], [0, 0, 1, 1], [], []>, precision = #tpu.contract_precision<fp32>} : vector<32x8xf32>, vector<8x8xf32>, vector<32x8xf32> -> vector<32x8xf32>
    %108 = arith.addf %95, %107 : vector<32x8xf32>
    %c0_48 = arith.constant 0 : index
    %c0_49 = arith.constant 0 : index
    %c0_50 = arith.constant 0 : index
    %109 = vector.load %arg2[%c0_48, %c0_49, %c0_50] : memref<2x1x8xf32, #tpu.memory_space<vmem>>, vector<1x1x8xf32>
    %110 = vector.shape_cast %109 : vector<1x1x8xf32> to vector<1x8xf32>
    %111 = vector.shape_cast %110 : vector<1x8xf32> to vector<1x8xf32>
    %112 = vector.broadcast %111 : vector<1x8xf32> to vector<16x8xf32>
    %c1_51 = arith.constant 1 : index
    %c0_52 = arith.constant 0 : index
    %c0_53 = arith.constant 0 : index
    %113 = vector.load %arg2[%c1_51, %c0_52, %c0_53] : memref<2x1x8xf32, #tpu.memory_space<vmem>>, vector<1x1x8xf32>
    %114 = vector.shape_cast %113 : vector<1x1x8xf32> to vector<1x8xf32>
    %115 = vector.shape_cast %114 : vector<1x8xf32> to vector<1x8xf32>
    %116 = vector.broadcast %115 : vector<1x8xf32> to vector<16x8xf32>
    %117 = tpu.concatenate %112, %116 in 0 : vector<16x8xf32>, vector<16x8xf32> -> vector<32x8xf32>
    %118 = arith.mulf %108, %117 : vector<32x8xf32>
    %c0_54 = arith.constant 0 : index
    %c0_55 = arith.constant 0 : index
    %c0_56 = arith.constant 0 : index
    %119 = vector.load %arg3[%c0_54, %c0_55, %c0_56] : memref<2x1x8xf32, #tpu.memory_space<vmem>>, vector<1x1x8xf32>
    %120 = vector.shape_cast %119 : vector<1x1x8xf32> to vector<1x8xf32>
    %121 = vector.shape_cast %120 : vector<1x8xf32> to vector<1x8xf32>
    %122 = vector.broadcast %121 : vector<1x8xf32> to vector<16x8xf32>
    %c1_57 = arith.constant 1 : index
    %c0_58 = arith.constant 0 : index
    %c0_59 = arith.constant 0 : index
    %123 = vector.load %arg3[%c1_57, %c0_58, %c0_59] : memref<2x1x8xf32, #tpu.memory_space<vmem>>, vector<1x1x8xf32>
    %124 = vector.shape_cast %123 : vector<1x1x8xf32> to vector<1x8xf32>
    %125 = vector.shape_cast %124 : vector<1x8xf32> to vector<1x8xf32>
    %126 = vector.broadcast %125 : vector<1x8xf32> to vector<16x8xf32>
    %127 = tpu.concatenate %122, %126 in 0 : vector<16x8xf32>, vector<16x8xf32> -> vector<32x8xf32>
    %128 = arith.addf %118, %127 : vector<32x8xf32>
    %c0_60 = arith.constant 0 : index
    %c0_61 = arith.constant 0 : index
    %129 = vector.load %arg9[%c0_60, %c0_61] : memref<4x8xf32, #tpu.memory_space<vmem>>, vector<4x8xf32>
    %cst_62 = arith.constant dense<0.000000e+00> : vector<32x8xf32>
    %130 = tpu.matmul %17, %129, %cst_62 {dimension_numbers = #tpu.dot_dimension_numbers<[1], [0], [0], [1], [0, 0, 1, 1], [], []>, precision = #tpu.contract_precision<fp32>} : vector<32x4xf32>, vector<4x8xf32>, vector<32x8xf32> -> vector<32x8xf32>
    %131 = arith.addf %128, %130 : vector<32x8xf32>
    %c0_63 = arith.constant 0 : index
    %c0_64 = arith.constant 0 : index
    %132 = vector.load %arg10[%c0_63, %c0_64] : memref<32x8xf32, #tpu.memory_space<vmem>>, vector<32x8xf32>
    tpu.vector_store %arg10[%c0_63, %c0_64], %131 {strides = array<i32>} : memref<32x8xf32, #tpu.memory_space<vmem>>, vector<32x8xf32>,
    return
  }
  func.func @transform_0(%arg0: i32) -> (i32, i32) {
    %c0_i32 = arith.constant 0 : i32
    %c0_i32_0 = arith.constant 0 : i32
    return %arg0, %c0_i32 : i32, i32
  }
  func.func @transform_1(%arg0: i32) -> (i32, i32, i32) {
    %c0_i32 = arith.constant 0 : i32
    %c0_i32_0 = arith.constant 0 : i32
    %c0_i32_1 = arith.constant 0 : i32
    return %arg0, %c0_i32, %c0_i32_0 : i32, i32, i32
  }
  func.func @transform_2(%arg0: i32) -> (i32, i32, i32) {
    %c0_i32 = arith.constant 0 : i32
    %c0_i32_0 = arith.constant 0 : i32
    %c0_i32_1 = arith.constant 0 : i32
    return %arg0, %c0_i32, %c0_i32_0 : i32, i32, i32
  }
  func.func @transform_3(%arg0: i32) -> (i32, i32, i32) {
    %c0_i32 = arith.constant 0 : i32
    %c0_i32_0 = arith.constant 0 : i32
    %c0_i32_1 = arith.constant 0 : i32
    %c0_i32_2 = arith.constant 0 : i32
    return %c0_i32, %c0_i32_0, %c0_i32_1 : i32, i32, i32
  }
  func.func @transform_4(%arg0: i32) -> (i32, i32) {
    %c0_i32 = arith.constant 0 : i32
    %c0_i32_0 = arith.constant 0 : i32
    %c0_i32_1 = arith.constant 0 : i32
    return %c0_i32, %c0_i32_0 : i32, i32
  }
  func.func @transform_5(%arg0: i32) -> (i32, i32) {
    %c0_i32 = arith.constant 0 : i32
    %c0_i32_0 = arith.constant 0 : i32
    %c0_i32_1 = arith.constant 0 : i32
    return %c0_i32, %c0_i32_0 : i32, i32
  }
  func.func @transform_6(%arg0: i32) -> (i32, i32) {
    %c0_i32 = arith.constant 0 : i32
    %c0_i32_0 = arith.constant 0 : i32
    %c0_i32_1 = arith.constant 0 : i32
    return %c0_i32, %c0_i32_0 : i32, i32
  }
  func.func @transform_7(%arg0: i32) -> (i32, i32, i32) {
    %c0_i32 = arith.constant 0 : i32
    %c0_i32_0 = arith.constant 0 : i32
    %c0_i32_1 = arith.constant 0 : i32
    %c0_i32_2 = arith.constant 0 : i32
    return %c0_i32, %c0_i32_0, %c0_i32_1 : i32, i32, i32
  }
  func.func @transform_8(%arg0: i32) -> (i32, i32) {
    %c0_i32 = arith.constant 0 : i32
    %c0_i32_0 = arith.constant 0 : i32
    %c0_i32_1 = arith.constant 0 : i32
    return %c0_i32, %c0_i32_0 : i32, i32
  }
  func.func @transform_9(%arg0: i32) -> (i32, i32) {
    %c0_i32 = arith.constant 0 : i32
    %c0_i32_0 = arith.constant 0 : i32
    return %arg0, %c0_i32 : i32, i32
  }
}

</mosaic_0001>

<bundles_post_ra>
// kernel: tpu_custom_call.1
= control target key start
LH: loop header
LB: loop body
LE: loop exit
PB: predicated region body
PF: predicated region fallthrough
CT: control target
= control target key end

     0   :  { %v16_v0 = vlaneseq  ;;  %vm23_vm0 = vcmask 64512   ;;  %s66_s0 = inlined_call_operand.vmem [shape: f32[32,8], index: 0, kind: input, shape index: {}]   ;;  %s67_s1 = inlined_call_operand.vmem [shape: f32[32,8], index: 1, kind: output, shape index: {}]  }
   0x1   :  { %v8_v1 = vld [vmem:[%s66_s0] sm:$0xff]  ;;  %v11_v2 = vld [vmem:[%s66_s0 + $0x18] sm:$0xff]  ;;  %v9_v3 = vld [vmem:[%s66_s0 + $0x8] sm:$0xff] }
   0x2   :  { %v12_v4 = vrot.slane %v8_v1, 7  ;;  %v15_v5 = vrot.slane %v11_v2, 7  ;;  %v17_v6 = vshrl.u32 %v16_v0, 7  ;;  %v13_v7 = vrot.slane %v9_v3, 7  ;;  %v10_v8 = vld [vmem:[%s66_s0 + $0x10] sm:$0xff] }
   0x3   :  { %v14_v9 = vrot.slane %v10_v8, 7 }
   0x4   :  { %vm18_vm1 = vcmp.lt.s32.totalorder %v17_v6, 1 }
   0x5   :  { %v22_v10 = vsel %vm18_vm1, %v15_v5, %v12_v4  ;;  %v21_v11 = vsel %vm18_vm1, %v12_v4, %v13_v7  ;;  %v20_v12 = vsel %vm18_vm1, %v13_v7, %v14_v9  ;;  %v19_v13 = vsel %vm18_vm1, %v14_v9, %v15_v5 }
   0x6   :  { %24 = vst.msk [vmem:[%s67_s1] sm:$0xff] %vm23_vm0, %v22_v10 }
   0x7   :  { %25 = vst.msk [vmem:[%s67_s1 + $0x8] sm:$0xff] %vm23_vm0, %v21_v11 }
   0x8   :  { %26 = vst.msk [vmem:[%s67_s1 + $0x10] sm:$0xff] %vm23_vm0, %v20_v12 }
   0x9   :  { %27 = vst.msk [vmem:[%s67_s1 + $0x18] sm:$0xff] %vm23_vm0, %v19_v13 }

// kernel: tpu_custom_call.1
= control target key start
LH: loop header
LB: loop body
LE: loop exit
PB: predicated region body
PF: predicated region fallthrough
CT: control target
= control target key end

     0   :  { %14 = vsyncpa [#allocation3], 0  ;;  %s2963_s0 = inlined_call_operand.vmem [shape: f32[32,4], index: 0, kind: input, shape index: {}]   ;;  %s2964_s1 = inlined_call_operand.vmem [shape: f32[2,1,8], index: 1, kind: input, shape index: {}]   ;;  %s2965_s2 = inlined_call_operand.hbm [shape: f32[2,1,8], index: 2, kind: input, shape index: {}]   ;;  %s2966_s3 = inlined_call_operand.vmem [shape: f32[3,4,8], index: 3, kind: input, shape index: {}]   ;;  %s2967_s4 = inlined_call_operand.hbm [shape: f32[1,8], index: 4, kind: input, shape index: {}]   ;;  %s2968_s5 = inlined_call_operand.hbm [shape: f32[1,8], index: 5, kind: input, shape index: {}]   ;;  %s2969_s6 = inlined_call_operand.hbm [shape: f32[1,8], index: 6, kind: input, shape index: {}]   ;;  %s2970_s7 = inlined_call_operand.vmem [shape: f32[3,8,8], index: 7, kind: input, shape index: {}]   ;;  %s2971_s8 = inlined_call_operand.vmem [shape: f32[4,8], index: 8, kind: input, shape index: {}]   ;;  %s2972_s9 = inlined_call_operand.vmem [shape: f32[32,8], index: 9, kind: output, shape index: {}]  }
   0x1   :  { %15 = vsyncpa [#allocation5], 0  ;;  %s41_s11 = sshll.u32 %s2967_s4, 4  ;;  %s42_s11 = int_to_ptr.hbm [resolvable:$true] %s41_s11 }
   0x2   :  { %16 = vsyncpa [#allocation8], 0  ;;  %s2408_s12 = smov [#allocation4]   ;;  %s25_s16 = sshll.u32 %s2965_s2, 4  ;;  %s26_s16 = int_to_ptr.hbm [resolvable:$true] %s25_s16 }
   0x3   :  { %s43_s13 = sshll.u32 %s2408_s12, 4  ;;  %s2409_s17 = smov [#allocation2]   ;;  %s44_s13 = int_to_ptr.vmem [resolvable:$true] %s43_s13 }
   0x4   :  { %46 = dma.hbm_to_vmem [thread:$0]  %s42_s11, 16, %s44_s13, [#allocation5]  }
   0x5   :  { %s27_s18 = sshll.u32 %s2409_s17, 4  ;;  %s2410_s19 = smov 16   ;;  %s28_s18 = int_to_ptr.vmem [resolvable:$true] %s27_s18 }
   0x6   :  { %s2411_s20 = smov 1   ;;  %s52_s4 = sshll.u32 %s2968_s5, 4  ;;  %s53_s4 = int_to_ptr.hbm [resolvable:$true] %s52_s4 }
   0x7   :  { %33 = dma.hbm_to_vmem [thread:$0]  %s26_s16, 32, %s28_s18, [#allocation3], %s2410_s19, %s2410_s19, %s2411_s20  }
   0x8   :  { %s2412_s23 = smov [#allocation6]   ;;  %s63_s2 = sshll.u32 %s2969_s6, 4  ;;  %s64_s2 = int_to_ptr.hbm [resolvable:$true] %s63_s2 }
   0x9   :  { %s54_s24 = sshll.u32 %s2412_s23, 4  ;;  %s2413_s27 = smov [#allocation7]   ;;  %s55_s24 = int_to_ptr.vmem [resolvable:$true] %s54_s24 }
   0xa   :  { %57 = dma.hbm_to_vmem [thread:$0]  %s53_s4, 16, %s55_s24, [#allocation5]  }
   0xb   :  { %s65_s28 = sshll.u32 %s2413_s27, 4  ;;  %s66_s28 = int_to_ptr.vmem [resolvable:$true] %s65_s28 }
   0xc   :  { %68 = dma.hbm_to_vmem [thread:$0]  %s64_s2, 16, %s66_s28, [#allocation8]  }
   0xd   :  { %2402 = dma.done.wait [#allocation3], 32  }
   0xe   :  { %2403 = vsyncadd [#allocation3], 4294967264 }
   0xf   :  { %2404 = dma.done.wait [#allocation5], 32  }
  0x10   :  { %2405 = vsyncadd [#allocation5], 4294967264 }
  0x11   :  { %2406 = dma.done.wait [#allocation8], 16  }
  0x12   :  { %2407 = vsyncadd [#allocation8], 4294967280  ;;  %v89_v0 = vlaneseq  ;;  %vm196_vm0 = vcmask 1043456   ;;  %v2256_v5 = vld [vmem:[%s2966_s3 + $0x4] sm:$0xf]  ;;  %v2490_v6 = vld [vmem:[%s2963_s0 + $0x8] sm:$0xff] }
  0x13   :  { %v2495_v7 = vld [vmem:[%s2963_s0 + $0x10] sm:$0xff]  ;;  %vm156_vm1 = vcmask 1040384   ;;  %vm183_vm2 = vcmask 31744   ;;  %v198_v8 = vsel %vm196_vm0, %v2256_v5, 0  ;;  %v158_v10 = vrot.slane %v2490_v6, 7  ;;  %v2509_v12 = vld [vmem:[%s2963_s0 + $0x18] sm:$0xff] }
  0x14   :  { %v2477_v1 = vshrl.u32 %v89_v0, 7  ;;  %v160_v11 = vrot.slane %v2495_v7, 7  ;;  %v2514_v13 = vld [vmem:[%s2963_s0] sm:$0xff]  ;;  %v215_v14 = vand.u32 4294901760, %v198_v8  ;;  %v162_v15 = vrot.slane %v2509_v12, 7 }
  0x15   :  { %v157_v17 = vrot.slane %v2514_v13, 7  ;;  %v2255_v18 = vld [vmem:[%s2966_s3 + $0x8] sm:$0xf]  ;;  %v718_v59 = vld [vmem:[%s2966_s3] sm:$0xf]  ;;  %v439_v60 = vsel %vm183_vm2, %v2514_v13, 0 }
  0x16   :  { %v2480_v2 = vadd.s32 16, %v2477_v1  ;;  %v98_v3 = vand.u32 15, %v2477_v1  ;;  %v161_v19 = vsel %vm156_vm1, %v158_v10, %v160_v11  ;;  %v448_v20 = vsel %vm196_vm0, %v2255_v18, 0  ;;  %2264 = vmatpush.msra.mxu2 %v215_v14  ;;  %216 = vmatpush.msra.mxu0 %v215_v14 }
  0x17   :  { %v266_v21 = vsub.f32 %v198_v8, %v215_v14  ;;  %v163_v23 = vsel %vm156_vm1, %v160_v11, %v162_v15  ;;  %v168_v24 = vsel %vm156_vm1, 0.0, %v157_v17  ;;  %v465_v28 = vand.u32 4294901760, %v448_v20 }
  0x18   :  { %v112_v4 = vand.u32 15, %v2480_v2  ;;  %vm2519_vm4 = vcmp.ge.s32.totalorder %v98_v3, 1  ;;  %v194_v26 = vsel %vm183_vm2, %v163_v23, 0  ;;  %v159_v35 = vsel %vm156_vm1, %v157_v17, %v158_v10 }
  0x19   :  { %v177_v27 = vsel %vm2519_vm4, %v168_v24, 0.0  ;;  %v267_v29 = vand.u32 4294901760, %v266_v21  ;;  %305 = vmatpush.msrb.mxu2 %v266_v21  ;;  %v2539_v31 = vand.u32 4294901760, %v194_v26  ;;  %v516_v34 = vsub.f32 %v448_v20, %v465_v28 }
  0x1a   :  { %vm2500_vm3 = vcmp.ge.s32.totalorder %v112_v4, 1  ;;  %v185_v32 = vsel %vm183_vm2, %v177_v27, 0  ;;  %v188_v39 = vsel %vm183_vm2, %v159_v35, 0  ;;  %v732_v61 = vsel %vm196_vm0, %v718_v59, 0 }
  0x1b   :  { %v179_v22 = vsel %vm2500_vm3, %v161_v19, 0.0  ;;  %v217_v33 = vand.u32 4294901760, %v185_v32  ;;  %v268_v36 = vsub.f32 %v266_v21, %v267_v29  ;;  %v2545_v38 = vsub.f32 %v194_v26, %v2539_v31  ;;  %387 = vmatpush.msrb.mxu0 %v267_v29 }
  0x1c   :  { %v191_v25 = vsel %vm183_vm2, %v179_v22, 0  ;;  %v225_v41 = vand.u32 4294901760, %v188_v39  ;;  %v517_v42 = vand.u32 4294901760, %v516_v34  ;;  %v749_v62 = vand.u32 4294901760, %v732_v61 }
  0x1d   :  { %v2537_v30 = vand.u32 4294901760, %v191_v25  ;;  %v218_v40 = vsub.f32 %v185_v32, %v217_v33  ;;  %v269_v43 = vand.u32 4294901760, %v268_v36  ;;  %v243_v49 = vand.u32 4294901760, %v2545_v38 }
  0x1e   :  { %v226_v46 = vsub.f32 %v188_v39, %v225_v41  ;;  %v518_v47 = vsub.f32 %v516_v34, %v517_v42  ;;  %v2558_v63 = vand.u32 4294901760, %v439_v60  ;;  %v800_v0 = vsub.f32 %v732_v61, %v749_v62 }
  0x1f   :  { %v234_v37 = vsub.f32 %v191_v25, %v2537_v30  ;;  %v219_v45 = vand.u32 4294901760, %v218_v40  ;;  %2265 = vmatpush.msra.mxu3 %v269_v43  ;;  %270 = vmatpush.msra.mxu1 %v269_v43  ;;  %v244_v55 = vsub.f32 %v2545_v38, %v243_v49  ;;  %v441_v11 = vsel %vm183_vm2, %v2490_v6, 0 }
  0x20   :  { %280 = vmatmul.f32.vlgmr.msra.gmra.mxu3 %v2537_v30  ;;  %272 = vmatmul.f32.vlgmr.msra.gmra.mxu1 %v217_v33  ;;  %v227_v51 = vand.u32 4294901760, %v226_v46  ;;  %v519_v52 = vand.u32 4294901760, %v518_v47  ;;  %2999 = vst [vmem:[#allocation12_spill] sm:$0xff] %v2558_v63  ;;  %v801_v5 = vand.u32 4294901760, %v800_v0  ;;  %v2562_v8 = vsub.f32 %v439_v60, %v2558_v63 }
  0x21   :  { %v235_v44 = vand.u32 4294901760, %v234_v37  ;;  %v220_v50 = vsub.f32 %v218_v40, %v219_v45  ;;  %343 = vmatpush.msrb.mxu3 %v215_v14  ;;  %421 = vmatpush.msrb.mxu1 %v215_v14  ;;  %v245_v57 = vand.u32 4294901760, %v244_v55  ;;  %v2570_v17 = vand.u32 4294901760, %v441_v11 }
  0x22   :  { %v228_v56 = vsub.f32 %v226_v46, %v227_v51  ;;  %3000 = vst [vmem:[#allocation13_spill] sm:$0xff] %v2562_v8  ;;  %v802_v10 = vsub.f32 %v800_v0, %v801_v5  ;;  %v2568_v15 = vand.u32 4294901760, %v2562_v8  ;;  %v443_v20 = vsel %vm183_vm2, %v2495_v7, 0 }
  0x23   :  { %v236_v48 = vsub.f32 %v234_v37, %v235_v44  ;;  %v221_v54 = vand.u32 4294901760, %v220_v50  ;;  %520 = vmatpush.msra.mxu3 %v519_v52  ;;  %593 = vmatpush.msra.mxu1 %v465_v28  ;;  %3002 = vst [vmem:[#allocation15_spill] sm:$0xff] %v2570_v17  ;;  %v2577_v19 = vsub.f32 %v441_v11, %v2570_v17  ;;  %v2587_v23 = vand.u32 4294901760, %v443_v20 }
  0x24   :  { %v229_v58 = vand.u32 4294901760, %v228_v56  ;;  %v803_v14 = vand.u32 4294901760, %v802_v10  ;;  %3001 = vst [vmem:[#allocation14_spill] sm:$0xff] %v2568_v15  ;;  %v470_v18 = vsub.f32 %v2562_v8, %v2568_v15  ;;  %v694_v24 = vrot.slane %v2514_v13, 6 }
  0x25   :  { %v237_v53 = vand.u32 4294901760, %v236_v48  ;;  %222 = vmatmul.f32.vlgmr.msra.gmra.mxu0 %v221_v54  ;;  %3003 = vst [vmem:[#allocation16_spill] sm:$0xff] %v2577_v19  ;;  %v2585_v22 = vand.u32 4294901760, %v2577_v19  ;;  %v2596_v26 = vsub.f32 %v443_v20, %v2587_v23  ;;  %v445_v27 = vsel %vm183_vm2, %v2509_v12, 0 }
  0x26   :  { %555 = vmatpush.msra.mxu0 %v516_v34  ;;  %v2582_v21 = vand.u32 4294901760, %v470_v18  ;;  %3006 = vst [vmem:[#allocation19_spill] sm:$0xff] %v2587_v23  ;;  %vm693_vm5 = vcmask 1041408   ;;  %vm2603_vm6 = vcmp.ge.s32.totalorder %v98_v3, 2  ;;  %v3008_v13 = vmov 0 }
  0x27   :  { %238 = vmatmul.f32.vlgmr.msra.gmra.mxu2 %v237_v53  ;;  %3005 = vst [vmem:[#allocation18_spill] sm:$0xff] %v2585_v22  ;;  %v478_v25 = vsub.f32 %v2577_v19, %v2585_v22  ;;  %v3009_v13 = vsel %vm2603_vm6, 4294967295, %v3008_v13  ;;  %v2610_v29 = vand.u32 4294901760, %v2596_v26  ;;  %v695_v34 = vrot.slane %v2490_v6, 6 }
  0x28   :  { %466 = vmatpush.msra.mxu2 %v465_v28  ;;  %284 = vmatmul.f32.gmra.mxu3 %v2539_v31  ;;  %3004 = vst [vmem:[#allocation17_spill] sm:$0xff] %v2582_v21  ;;  %vm2646_vm7 = vcmp.ge.s32.totalorder %v112_v4, 2  ;;  %v3018_v43 = vmov 0  ;;  %v699_v48 = vrot.slane %v2509_v12, 6  ;;  %vm1065_vm12 = vcmask 64512  }
  0x29   :  { %276 = vmatmul.f32.gmra.mxu1 %v225_v41  ;;  %3007 = vst [vmem:[#allocation20_spill] sm:$0xff] %v2596_v26  ;;  %v486_v3 = vsub.f32 %v2596_v26, %v2610_v29  ;;  %v3019_v43 = vsel %vm2646_vm7, 4294967295, %v3018_v43 }
  0x2a   :  { %3010 = vst [vmem:[#allocation21_spill] sm:$0xff] %v3009_v13 }
  0x2b   :  { %3012 = vst [vmem:[#allocation23_spill] sm:$0xff] %v2610_v29  ;;  %v2628_v35 = vand.u32 4294901760, %v486_v3 }
  0x2c   :  { %3020 = vst [vmem:[#allocation29_spill] sm:$0xff] %v3019_v43 }
  0x2d   :  { %230 = vmatmul.f32.gmra.mxu0 %v229_v58  ;;  %3015 = vst [vmem:[#allocation26_spill] sm:$0xff] %v2628_v35 }
  0x2f   :  { %246 = vmatmul.f32.gmra.mxu2 %v245_v57 }
  0x30   :  { %347 = vmatmul.f32.vlgmr.msrb.gmra.mxu3 %v219_v45 }
  0x31   :  { %423 = vmatmul.f32.vlgmr.msrb.gmra.mxu1 %v217_v33  ;;  %671 = vmatpush.msrb.mxu3 %v465_v28  ;;  %v2607_v28 = vand.u32 4294901760, %v478_v25 }
  0x32   :  { %804 = vmatpush.msrb.mxu1 %v803_v14 }
  0x33   :  { %3011 = vst [vmem:[#allocation22_spill] sm:$0xff] %v2607_v28 }
  0x35   :  { %389 = vmatmul.f32.vlgmr.msrb.gmra.mxu0 %v217_v33 }
  0x36   :  { %750 = vmatpush.msrb.mxu0 %v749_v62 }
  0x37   :  { %308 = vmatmul.f32.vlgmr.msrb.gmra.mxu2 %v218_v40  ;;  %v697_v40 = vrot.slane %v2495_v7, 6 }
  0x38   :  { %637 = vmatpush.msrb.mxu2 %v517_v42  ;;  %353 = vmatmul.f32.gmra.mxu3 %v227_v51 }
  0x39   :  { %427 = vmatmul.f32.gmra.mxu1 %v225_v41  ;;  %v700_v52 = vsel %vm693_vm5, %v697_v40, %v699_v48 }
  0x3a   :  { %v729_v55 = vsel %vm183_vm2, %v700_v52, 0 }
  0x3b   :  { %v775_v57 = vand.u32 4294901760, %v729_v55 }
  0x3d   :  { %393 = vmatmul.f32.gmra.mxu0 %v225_v41  ;;  %v776_v59 = vsub.f32 %v729_v55, %v775_v57 }
  0x3f   :  { %313 = vmatmul.f32.gmra.mxu2 %v226_v46  ;;  %v777_v61 = vand.u32 4294901760, %v776_v59 }
  0x40   :  { %359 = vmatmul.f32.gmra.mxu3 %v235_v44  ;;  %v698_v44 = vsel %vm693_vm5, %v695_v34, %v697_v40 }
  0x41   :  { %431 = vmatmul.f32.gmra.mxu1 %v2537_v30  ;;  %v716_v46 = vsel %vm2646_vm7, %v698_v44, 0.0 }
  0x42   :  { %v726_v47 = vsel %vm183_vm2, %v716_v46, 0 }
  0x43   :  { %v767_v51 = vand.u32 4294901760, %v726_v47 }
  0x45   :  { %397 = vmatmul.f32.gmra.mxu0 %v2537_v30  ;;  %v2612_v30 = vand.u32 4294901760, %v445_v27  ;;  %v768_v54 = vsub.f32 %v726_v47, %v767_v51 }
  0x47   :  { %318 = vmatmul.f32.gmra.mxu2 %v234_v37  ;;  %3013 = vst [vmem:[#allocation24_spill] sm:$0xff] %v2612_v30  ;;  %v2623_v32 = vsub.f32 %v445_v27, %v2612_v30  ;;  %v769_v12 = vand.u32 4294901760, %v768_v54 }
  0x48   :  { %365 = vmatmul.f32.gmra.mxu3 %v243_v49 }
  0x49   :  { %435 = vmatmul.f32.gmra.mxu1 %v2539_v31  ;;  %3014 = vst [vmem:[#allocation25_spill] sm:$0xff] %v2623_v32  ;;  %v2631_v36 = vand.u32 4294901760, %v2623_v32  ;;  %v770_v58 = vsub.f32 %v768_v54, %v769_v12 }
  0x4b   :  { %3016 = vst [vmem:[#allocation27_spill] sm:$0xff] %v2631_v36  ;;  %v494_v39 = vsub.f32 %v2623_v32, %v2631_v36  ;;  %v771_v60 = vand.u32 4294901760, %v770_v58 }
  0x4d   :  { %401 = vmatmul.f32.gmra.mxu0 %v2539_v31  ;;  %v705_v31 = vsel %vm693_vm5, 0.0, %v694_v24  ;;  %v2642_v42 = vand.u32 4294901760, %v494_v39 }
  0x4e   :  { %v714_v1 = vsel %vm2603_vm6, %v705_v31, 0.0 }
  0x4f   :  { %323 = vmatmul.f32.gmra.mxu2 %v2545_v38  ;;  %v720_v33 = vsel %vm183_vm2, %v714_v1, 0  ;;  %v696_v38 = vsel %vm693_vm5, %v694_v24, %v695_v34  ;;  %3017 = vst [vmem:[#allocation28_spill] sm:$0xff] %v2642_v42 }
  0x50   :  { %522 = vmatmul.f32.vlgmr.msra.gmra.mxu3 %v2558_v63  ;;  %v751_v37 = vand.u32 4294901760, %v720_v33  ;;  %v723_v41 = vsel %vm183_vm2, %v696_v38, 0 }
  0x51   :  { %597 = vmatmul.f32.vlgmr.msra.gmra.mxu1 %v2568_v15  ;;  %877 = vmatpush.msra.mxu3 %v749_v62  ;;  %v759_v45 = vand.u32 4294901760, %v723_v41 }
  0x52   :  { %955 = vmatpush.msra.mxu1 %v749_v62  ;;  %v752_v6 = vsub.f32 %v720_v33, %v751_v37  ;;  %v778_v62 = vsub.f32 %v776_v59, %v777_v61 }
  0x53   :  { %v760_v4 = vsub.f32 %v723_v41, %v759_v45 }
  0x54   :  { %v753_v7 = vand.u32 4294901760, %v752_v6 }
  0x55   :  { %558 = vmatmul.f32.vlgmr.msra.gmra.mxu0 %v2562_v8  ;;  %v761_v50 = vand.u32 4294901760, %v760_v4 }
  0x56   :  { %921 = vmatpush.msra.mxu0 %v801_v5  ;;  %v754_v2 = vsub.f32 %v752_v6, %v753_v7 }
  0x57   :  { %472 = vmatmul.f32.vlgmr.msra.gmra.mxu2 %v2582_v21  ;;  %v762_v53 = vsub.f32 %v760_v4, %v761_v50 }
  0x58   :  { %839 = vmatpush.msra.mxu2 %v800_v0  ;;  %526 = vmatmul.f32.gmra.mxu3 %v2570_v17  ;;  %v755_v49 = vand.u32 4294901760, %v754_v2  ;;  %v779_v0 = vand.u32 4294901760, %v778_v62 }
  0x59   :  { %603 = vmatmul.f32.gmra.mxu1 %v2585_v22  ;;  %v763_v56 = vand.u32 4294901760, %v762_v53 }
  0x5d   :  { %563 = vmatmul.f32.gmra.mxu0 %v2577_v19 }
  0x5f   :  { %480 = vmatmul.f32.gmra.mxu2 %v2607_v28 }
  0x60   :  { %530 = vmatmul.f32.gmra.mxu3 %v2587_v23 }
  0x61   :  { %609 = vmatmul.f32.gmra.mxu1 %v2610_v29 }
  0x65   :  { %568 = vmatmul.f32.gmra.mxu0 %v2596_v26 }
  0x67   :  { %488 = vmatmul.f32.gmra.mxu2 %v2628_v35 }
  0x68   :  { %534 = vmatmul.f32.gmra.mxu3 %v2612_v30 }
  0x69   :  { %615 = vmatmul.f32.gmra.mxu1 %v2631_v36 }
  0x6d   :  { %573 = vmatmul.f32.gmra.mxu0 %v2623_v32 }
  0x6f   :  { %496 = vmatmul.f32.gmra.mxu2 %v2642_v42 }
  0x70   :  { %673 = vmatmul.f32.vlgmr.msrb.gmra.mxu3 %v2558_v63 }
  0x71   :  { %806 = vmatmul.f32.vlgmr.msrb.gmra.mxu1 %v751_v37 }
  0x75   :  { %756 = vmatmul.f32.vlgmr.msrb.gmra.mxu0 %v755_v49 }
  0x77   :  { %639 = vmatmul.f32.vlgmr.msrb.gmra.mxu2 %v2558_v63 }
  0x78   :  { %677 = vmatmul.f32.gmra.mxu3 %v2570_v17 }
  0x79   :  { %810 = vmatmul.f32.gmra.mxu1 %v759_v45 }
  0x7d   :  { %764 = vmatmul.f32.gmra.mxu0 %v763_v56 }
  0x7f   :  { %643 = vmatmul.f32.gmra.mxu2 %v2570_v17 }
  0x80   :  { %681 = vmatmul.f32.gmra.mxu3 %v2587_v23 }
  0x81   :  { %814 = vmatmul.f32.gmra.mxu1 %v767_v51 }
  0x85   :  { %772 = vmatmul.f32.gmra.mxu0 %v771_v60 }
  0x87   :  { %647 = vmatmul.f32.gmra.mxu2 %v2587_v23 }
  0x88   :  { %685 = vmatmul.f32.gmra.mxu3 %v2612_v30 }
  0x89   :  { %818 = vmatmul.f32.gmra.mxu1 %v775_v57 }
  0x8d   :  { %780 = vmatmul.f32.gmra.mxu0 %v779_v0 }
  0x8f   :  { %651 = vmatmul.f32.gmra.mxu2 %v2612_v30 }
  0x90   :  { %881 = vmatmul.f32.vlgmr.msra.gmra.mxu3 %v753_v7 }
  0x91   :  { %957 = vmatmul.f32.vlgmr.msra.gmra.mxu1 %v751_v37 }
  0x95   :  { %923 = vmatmul.f32.vlgmr.msra.gmra.mxu0 %v751_v37 }
  0x97   :  { %842 = vmatmul.f32.vlgmr.msra.gmra.mxu2 %v752_v6 }
  0x98   :  { %887 = vmatmul.f32.gmra.mxu3 %v761_v50 }
  0x99   :  { %961 = vmatmul.f32.gmra.mxu1 %v759_v45 }
  0x9d   :  { %927 = vmatmul.f32.gmra.mxu0 %v759_v45  ;;  %v273_v5 = vpop.f32.mrf.mxu1 }
  0x9f   :  { %847 = vmatmul.f32.gmra.mxu2 %v760_v4 }
  0xa0   :  { %893 = vmatmul.f32.gmra.mxu3 %v769_v12 }
  0xa1   :  { %965 = vmatmul.f32.gmra.mxu1 %v767_v51 }
  0xa2   :  { %v223_v10 = vpop.f32.mrf.mxu0 }
  0xa3   :  { %v2669_v11 = vpop.f32.mrf.mxu3  ;;  %v274_v26 = vadd.f32 %v273_v5, %v223_v10 }
  0xa5   :  { %931 = vmatmul.f32.gmra.mxu0 %v767_v51 }
  0xa6   :  { %v277_v14 = vpop.f32.mrf.mxu1 }
  0xa7   :  { %852 = vmatmul.f32.gmra.mxu2 %v768_v54 }
  0xa8   :  { %899 = vmatmul.f32.gmra.mxu3 %v777_v61 }
  0xa9   :  { %969 = vmatmul.f32.gmra.mxu1 %v775_v57 }
  0xaa   :  { %v239_v18 = vpop.f32.mrf.mxu2  ;;  %v231_v20 = vpop.f32.mrf.mxu0 }
  0xab   :  { %v2671_v24 = vpop.f32.mrf.mxu3  ;;  %v278_v42 = vadd.f32 %v277_v14, %v231_v20  ;;  %v282_v5 = vadd.f32 %v2669_v11, %v239_v18 }
  0xad   :  { %935 = vmatmul.f32.gmra.mxu0 %v775_v57 }
  0xae   :  { %v424_v25 = vpop.f32.mrf.mxu1 }
  0xaf   :  { %857 = vmatmul.f32.gmra.mxu2 %v776_v59 }
  0xb2   :  { %v2673_v27 = vpop.f32.mrf.mxu2  ;;  %v390_v31 = vpop.f32.mrf.mxu0 }
  0xb3   :  { %v348_v1 = vpop.f32.mrf.mxu3 }
  0xb6   :  { %v428_v3 = vpop.f32.mrf.mxu1 }
  0xba   :  { %v309_v33 = vpop.f32.mrf.mxu2  ;;  %v394_v34 = vpop.f32.mrf.mxu0 }
  0xbb   :  { %v354_v37 = vpop.f32.mrf.mxu3  ;;  %v310_v19 = vadd.f32 %v309_v33, %v274_v26 }
  0xbd   :  { %v349_v8 = vadd.f32 %v348_v1, %v310_v19 }
  0xbe   :  { %v2675_v38 = vpop.f32.mrf.mxu1 }
  0xbf   :  { %v391_v35 = vadd.f32 %v390_v31, %v349_v8 }
  0xc1   :  { %v425_v63 = vadd.f32 %v424_v25, %v391_v35 }
  0xc2   :  { %v314_v39 = vpop.f32.mrf.mxu2  ;;  %v398_v40 = vpop.f32.mrf.mxu0 }
  0xc3   :  { %v360_v6 = vpop.f32.mrf.mxu3  ;;  %v315_v17 = vadd.f32 %v314_v39, %v278_v42 }
  0xc5   :  { %v355_v21 = vadd.f32 %v354_v37, %v315_v17  ;;  %v286_v17 = vadd.f32 %v2671_v24, %v2673_v27 }
  0xc6   :  { %v2677_v41 = vpop.f32.mrf.mxu1 }
  0xc7   :  { %v395_v1 = vadd.f32 %v394_v34, %v355_v21 }
  0xc9   :  { %v429_v8 = vadd.f32 %v428_v3, %v395_v1 }
  0xca   :  { %v319_v44 = vpop.f32.mrf.mxu2  ;;  %v2679_v7 = vpop.f32.mrf.mxu0 }
  0xcb   :  { %v2681_v45 = vpop.f32.mrf.mxu3  ;;  %v320_v33 = vadd.f32 %v319_v44, %v282_v5 }
  0xcd   :  { %v361_v42 = vadd.f32 %v360_v6, %v320_v33 }
  0xce   :  { %v598_v46 = vpop.f32.mrf.mxu1 }
  0xd2   :  { %v324_v2 = vpop.f32.mrf.mxu2  ;;  %v559_v4 = vpop.f32.mrf.mxu0 }
  0xd3   :  { %v523_v47 = vpop.f32.mrf.mxu3  ;;  %v325_v18 = vadd.f32 %v324_v2, %v286_v17 }
  0xd5   :  { %v367_v3 = vadd.f32 %v2681_v45, %v325_v18 }
  0xd6   :  { %v2683_v48 = vpop.f32.mrf.mxu1 }
  0xda   :  { %v473_v49 = vpop.f32.mrf.mxu2  ;;  %v564_v50 = vpop.f32.mrf.mxu0 }
  0xdb   :  { %v527_v51 = vpop.f32.mrf.mxu3  ;;  %v474_v10 = vadd.f32 %v473_v49, %v425_v63  ;;  %v399_v63 = vadd.f32 %v398_v40, %v361_v42 }
  0xdd   :  { %v524_v20 = vadd.f32 %v523_v47, %v474_v10  ;;  %v433_v44 = vadd.f32 %v2675_v38, %v399_v63 }
  0xde   :  { %v2685_v52 = vpop.f32.mrf.mxu1 }
  0xdf   :  { %v560_v35 = vadd.f32 %v559_v4, %v524_v20 }
  0xe1   :  { %v599_v13 = vadd.f32 %v598_v46, %v560_v35 }
  0xe2   :  { %v481_v53 = vpop.f32.mrf.mxu2  ;;  %v2687_v54 = vpop.f32.mrf.mxu0 }
  0xe3   :  { %v2689_v55 = vpop.f32.mrf.mxu3  ;;  %v482_v25 = vadd.f32 %v481_v53, %v429_v8  ;;  %v403_v53 = vadd.f32 %v2679_v7, %v367_v3 }
  0xe5   :  { %v528_v21 = vadd.f32 %v527_v51, %v482_v25 }
  0xe6   :  { %v2691_v56 = vpop.f32.mrf.mxu1 }
  0xe7   :  { %v565_v5 = vadd.f32 %v564_v50, %v528_v21  ;;  %v437_v50 = vadd.f32 %v2677_v41, %v403_v53 }
  0xe9   :  { %v605_v38 = vadd.f32 %v2683_v48, %v565_v5 }
  0xea   :  { %v489_v12 = vpop.f32.mrf.mxu2  ;;  %v2693_v57 = vpop.f32.mrf.mxu0 }
  0xeb   :  { %v2695_v58 = vpop.f32.mrf.mxu3  ;;  %v490_v10 = vadd.f32 %v489_v12, %v433_v44 }
  0xed   :  { %v532_v45 = vadd.f32 %v2689_v55, %v490_v10 }
  0xee   :  { %v807_v60 = vpop.f32.mrf.mxu1 }
  0xf2   :  { %v2697_v59 = vpop.f32.mrf.mxu2  ;;  %v757_v61 = vpop.f32.mrf.mxu0 }
  0xf3   :  { %v674_v62 = vpop.f32.mrf.mxu3  ;;  %v808_v39 = vadd.f32 %v807_v60, %v757_v61  ;;  %v2721_v61 = vld [vmem:[#allocation4] ss:$0 sm:$0xff] }
  0xf6   :  { %v811_v32 = vpop.f32.mrf.mxu1 }
  0xfa   :  { %v640_v0 = vpop.f32.mrf.mxu2  ;;  %v765_v36 = vpop.f32.mrf.mxu0 }
  0xfb   :  { %v2699_v29 = vpop.f32.mrf.mxu3  ;;  %v641_v6 = vadd.f32 %v640_v0, %v599_v13  ;;  %v812_v2 = vadd.f32 %v811_v32, %v765_v36  ;;  %v570_v32 = vadd.f32 %v2687_v54, %v532_v45  ;;  %v498_v36 = vadd.f32 %v2697_v59, %v437_v50 }
  0xfd   :  { %v675_v40 = vadd.f32 %v674_v62, %v641_v6  ;;  %v611_v42 = vadd.f32 %v2685_v52, %v570_v32 }
  0xfe   :  { %v815_v30 = vpop.f32.mrf.mxu1 }
 0x102   :  { %v644_v22 = vpop.f32.mrf.mxu2  ;;  %v2701_v15 = vpop.f32.mrf.mxu0 }
 0x103   :  { %v2703_v23 = vpop.f32.mrf.mxu3  ;;  %v645_v12 = vadd.f32 %v644_v22, %v605_v38  ;;  %v816_v55 = vadd.f32 %v815_v30, %v2701_v15 }
 0x105   :  { %v679_v48 = vadd.f32 %v2699_v29, %v645_v12 }
 0x106   :  { %v2712_v19 = vpop.f32.mrf.mxu1 }
 0x10a   :  { %v2705_v28 = vpop.f32.mrf.mxu2  ;;  %v2707_v43 = vpop.f32.mrf.mxu0 }
 0x10b   :  { %v2710_v26 = vpop.f32.mrf.mxu3  ;;  %v649_v59 = vadd.f32 %v2705_v28, %v611_v42 }
 0x10d   :  { %v683_v52 = vadd.f32 %v2703_v23, %v649_v59 }
 0x10e   :  { %v958_v11 = vpop.f32.mrf.mxu1 }
 0x112   :  { %v2714_v14 = vpop.f32.mrf.mxu2  ;;  %v924_v31 = vpop.f32.mrf.mxu0 }
 0x113   :  { %v882_v37 = vpop.f32.mrf.mxu3 }
 0x116   :  { %v962_v51 = vpop.f32.mrf.mxu1 }
 0x11a   :  { %v843_v49 = vpop.f32.mrf.mxu2  ;;  %v928_v4 = vpop.f32.mrf.mxu0 }
 0x11b   :  { %v844_v34 = vadd.f32 %v843_v49, %v808_v39  ;;  %v888_v27 = vpop.f32.mrf.mxu3 }
 0x11d   :  { %v883_v47 = vadd.f32 %v882_v37, %v844_v34 }
 0x11e   :  { %v966_v35 = vpop.f32.mrf.mxu1 }
 0x11f   :  { %v925_v24 = vadd.f32 %v924_v31, %v883_v47  ;;  %v536_v31 = vadd.f32 %v2695_v58, %v498_v36  ;;  %v820_v58 = vadd.f32 %v2712_v19, %v2707_v43 }
 0x121   :  { %v959_v60 = vadd.f32 %v958_v11, %v925_v24  ;;  %v575_v15 = vadd.f32 %v2693_v57, %v536_v31 }
 0x122   :  { %v848_v46 = vpop.f32.mrf.mxu2  ;;  %v932_v22 = vpop.f32.mrf.mxu0 }
 0x123   :  { %v973_v13 = vadd.f32 %v959_v60, %v675_v40  ;;  %v849_v0 = vadd.f32 %v848_v46, %v812_v2  ;;  %v894_v20 = vpop.f32.mrf.mxu3  ;;  %v617_v49 = vadd.f32 %v2691_v56, %v575_v15 }
 0x125   :  { %v889_v1 = vadd.f32 %v888_v27, %v849_v0  ;;  %v2727_v33 = vadd.f32 %v2721_v61, %v973_v13  ;;  %v653_v57 = vadd.f32 %v2714_v14, %v617_v49 }
 0x126   :  { %v970_v23 = vpop.f32.mrf.mxu1 }
 0x127   :  { %v929_v7 = vadd.f32 %v928_v4, %v889_v1  ;;  %v2257_v62 = vmul.f32 -1.442695, %v2727_v33  ;;  %v687_v24 = vadd.f32 %v2710_v26, %v653_v57 }
 0x129   :  { %v963_v8 = vadd.f32 %v962_v51, %v929_v7  ;;  %2280 = vpow2.f32 %v2257_v62 }
 0x12a   :  { %v853_v41 = vpop.f32.mrf.mxu2  ;;  %v936_v44 = vpop.f32.mrf.mxu0 }
 0x12b   :  { %v974_v17 = vadd.f32 %v963_v8, %v679_v48  ;;  %v854_v54 = vadd.f32 %v853_v41, %v816_v55  ;;  %v900_v28 = vpop.f32.mrf.mxu3 }
 0x12d   :  { %v895_v25 = vadd.f32 %v894_v20, %v854_v54  ;;  %v2738_v37 = vadd.f32 %v2721_v61, %v974_v17 }
 0x12f   :  { %v2281_v29 = vpop.eup %2280  ;;  %v933_v30 = vadd.f32 %v932_v22, %v895_v25  ;;  %v2258_v11 = vmul.f32 -1.442695, %v2738_v37 }
 0x130   :  { %v997_v63 = vadd.f32 1.0, %v2281_v29 }
 0x131   :  { %v967_v18 = vadd.f32 %v966_v35, %v933_v30  ;;  %2282 = vpow2.f32 %v2258_v11 }
 0x132   :  { %v858_v39 = vpop.f32.mrf.mxu2  ;;  %2284 = vrcp.f32 %v997_v63  ;;  %v1012_v14 = vand.u32 2147483648, %v997_v63  ;;  %v1010_v2 = vand.u32 2147483647, %v997_v63  ;;  %vm1006_vm9 = vweird.f32 %v997_v63 }
 0x133   :  { %v975_v21 = vadd.f32 %v967_v18, %v683_v52  ;;  %v859_v34 = vadd.f32 %v858_v39, %v820_v58 }
 0x134   :  { %v1013_v26 = vor.u32 1.1754944e-38, %v1012_v14  ;;  %vm1011_vm11 = vcmp.eq.f32.partialorder %v1010_v2, 8.507059e+37 }
 0x135   :  { %v901_v3 = vadd.f32 %v900_v28, %v859_v34  ;;  %v2748_v6 = vadd.f32 %v2721_v61, %v975_v21 }
 0x137   :  { %v2283_v47 = vpop.eup %2282  ;;  %v937_v5 = vadd.f32 %v936_v44, %v901_v3  ;;  %v2259_v43 = vmul.f32 -1.442695, %v2748_v6 }
 0x138   :  { %v2285_v19 = vpop.eup %2284  ;;  %v998_v10 = vadd.f32 1.0, %v2283_v47 }
 0x139   :  { %v971_v27 = vadd.f32 %v970_v23, %v937_v5  ;;  %v1002_v56 = vmul.f32 %v2285_v19, %v997_v63  ;;  %2286 = vpow2.f32 %v2259_v43  ;;  %vm1007_vm8 = vweird.f32 %v2285_v19 }
 0x13a   :  { %2288 = vrcp.f32 %v998_v10  ;;  %vm1008_vm10 = vmor %vm1006_vm9, %vm1007_vm8  ;;  %v1027_v32 = vand.u32 2147483648, %v998_v10  ;;  %v1025_v62 = vand.u32 2147483647, %v998_v10  ;;  %vm1021_vm14 = vweird.f32 %v998_v10 }
 0x13b   :  { %v976_v4 = vadd.f32 %v971_v27, %v687_v24  ;;  %v1003_v53 = vsub.f32 1.0, %v1002_v56 }
 0x13c   :  { %v1028_v8 = vor.u32 1.1754944e-38, %v1027_v32  ;;  %vm1026_vm2 = vcmp.eq.f32.partialorder %v1025_v62, 8.507059e+37 }
 0x13d   :  { %v1004_v40 = vmul.f32 %v2285_v19, %v1003_v53  ;;  %v2753_v60 = vadd.f32 %v2721_v61, %v976_v4 }
 0x13f   :  { %v2287_v46 = vpop.eup %2286  ;;  %v1005_v51 = vadd.f32 %v2285_v19, %v1004_v40  ;;  %v2260_v38 = vmul.f32 -1.442695, %v2753_v60 }
 0x140   :  { %v2289_v45 = vpop.eup %2288  ;;  %v999_v13 = vadd.f32 1.0, %v2287_v46 }
 0x141   :  { %v1009_v0 = vsel %vm1008_vm10, %v2285_v19, %v1005_v51  ;;  %v1017_v50 = vmul.f32 %v2289_v45, %v998_v10  ;;  %2290 = vpow2.f32 %v2260_v38  ;;  %vm1022_vm13 = vweird.f32 %v2289_v45 }
 0x142   :  { %v1014_v12 = vsel %vm1011_vm11, %v1013_v26, %v1009_v0  ;;  %2292 = vrcp.f32 %v999_v13  ;;  %vm1023_vm15 = vmor %vm1021_vm14, %vm1022_vm13  ;;  %v1042_v54 = vand.u32 2147483648, %v999_v13  ;;  %v1040_v25 = vand.u32 2147483647, %v999_v13 }
 0x143   :  { %v2757_v1 = vmul.f32 %v1014_v12, %v2727_v33  ;;  %v1018_v61 = vsub.f32 1.0, %v1017_v50  ;;  %vm1036_vm9 = vweird.f32 %v999_v13 }
 0x144   :  { %v1043_v30 = vor.u32 1.1754944e-38, %v1042_v54  ;;  %vm1041_vm11 = vcmp.eq.f32.partialorder %v1040_v25, 8.507059e+37 }
 0x145   :  { %v1066_v36 = vsel %vm1065_vm12, %v2757_v1, 0.0  ;;  %v1019_v7 = vmul.f32 %v2289_v45, %v1018_v61 }
 0x146   :  { %1067 = vadd.xlane.f32.xlu0 %v1066_v36  ;;  %v2262_v36 = vld [vmem:[%s2970_s7 + $0x8] sm:$0xff] }
 0x147   :  { %v2291_v20 = vpop.eup %2290  ;;  %v1020_v48 = vadd.f32 %v2289_v45, %v1019_v7  ;;  %v1228_v7 = vand.u32 4294901760, %v2262_v36 }
 0x148   :  { %v2293_v55 = vpop.eup %2292  ;;  %v1000_v41 = vadd.f32 1.0, %v2291_v20 }
 0x149   :  { %v1024_v22 = vsel %vm1023_vm15, %v2289_v45, %v1020_v48  ;;  %v1032_v33 = vmul.f32 %v2293_v55, %v999_v13  ;;  %vm1037_vm8 = vweird.f32 %v2293_v55  ;;  %1229 = vmatpush.msrb.mxu2 %v1228_v7  ;;  %v1279_v62 = vsub.f32 %v2262_v36, %v1228_v7  ;;  %1356 = vmatpush.msrb.mxu1 %v1228_v7 }
 0x14a   :  { %v1029_v42 = vsel %vm1026_vm2, %v1028_v8, %v1024_v22  ;;  %2294 = vrcp.f32 %v1000_v41  ;;  %vm1038_vm10 = vmor %vm1036_vm9, %vm1037_vm8  ;;  %v1057_v18 = vand.u32 2147483648, %v1000_v41  ;;  %v1055_v49 = vand.u32 2147483647, %v1000_v41 }
 0x14b   :  { %v1062_v31 = vmul.f32 %v1029_v42, %v2738_v37  ;;  %v1033_v17 = vsub.f32 1.0, %v1032_v33  ;;  %vm1051_vm14 = vweird.f32 %v1000_v41  ;;  %v1280_v20 = vand.u32 4294901760, %v1279_v62  ;;  %1318 = vmatpush.msrb.mxu0 %v1279_v62 }
 0x14c   :  { %v1058_v34 = vor.u32 1.1754944e-38, %v1057_v18  ;;  %vm1056_vm2 = vcmp.eq.f32.partialorder %v1055_v49, 8.507059e+37 }
 0x14d   :  { %v1069_v35 = vsel %vm1065_vm12, %v1062_v31, 0.0  ;;  %v1034_v59 = vmul.f32 %v2293_v55, %v1033_v17  ;;  %1400 = vmatpush.msra.mxu2 %v1280_v20 }
 0x14e   :  { %1070 = vadd.xlane.f32.xlu0 %v1069_v35 }
 0x14f   :  { %v1035_v29 = vadd.f32 %v2293_v55, %v1034_v59 }
 0x150   :  { %v2295_v15 = vpop.eup %2294 }
 0x151   :  { %v1039_v11 = vsel %vm1038_vm10, %v2293_v55, %v1035_v29  ;;  %v1047_v63 = vmul.f32 %v2295_v15, %v1000_v41  ;;  %vm1052_vm13 = vweird.f32 %v2295_v15  ;;  %v1281_v55 = vsub.f32 %v1279_v62, %v1280_v20 }
 0x152   :  { %v1044_v52 = vsel %vm1041_vm11, %v1043_v30, %v1039_v11  ;;  %vm1053_vm15 = vmor %vm1051_vm14, %vm1052_vm13 }
 0x153   :  { %v1063_v58 = vmul.f32 %v1044_v52, %v2748_v6  ;;  %v1048_v37 = vsub.f32 1.0, %v1047_v63  ;;  %v2414_v6 = vmov 8.0   ;;  %v1282_v41 = vand.u32 4294901760, %v1281_v55 }
 0x154   :  { %2296 = vrcp.f32 %v2414_v6 }
 0x155   :  { %v1072_v39 = vsel %vm1065_vm12, %v1063_v58, 0.0  ;;  %v1049_v28 = vmul.f32 %v2295_v15, %v1048_v37  ;;  %1283 = vmatpush.msrb.mxu3 %v1282_v41 }
 0x156   :  { %1073 = vadd.xlane.f32.xlu1 %v1072_v39  ;;  %v2261_v39 = vld [vmem:[%s2970_s7 + $0x10] sm:$0xff] }
 0x157   :  { %v1050_v21 = vadd.f32 %v2295_v15, %v1049_v28  ;;  %1434 = vmatpush.msra.mxu3 %v1228_v7  ;;  %v2801_v28 = vld [vmem:[#allocation7] ss:$0 sm:$0xff] }
 0x159   :  { %v1054_v44 = vsel %vm1053_vm15, %v2295_v15, %v1050_v21  ;;  %v1475_v21 = vand.u32 4294901760, %v2261_v39 }
 0x15a   :  { %v1059_v57 = vsel %vm1056_vm2, %v1058_v34, %v1054_v44  ;;  %v2297_v47 = vpop.eup %2296 }
 0x15b   :  { %v1064_v3 = vmul.f32 %v1059_v57, %v2753_v60  ;;  %v1079_v5 = vmul.f32 8.0, %v2297_v47  ;;  %vm1083_vm8 = vweird.f32 %v2297_v47  ;;  %1476 = vmatpush.msra.mxu0 %v1475_v21 }
 0x15d   :  { %v1075_v23 = vsel %vm1065_vm12, %v1064_v3, 0.0  ;;  %v1080_v43 = vsub.f32 1.0, %v1079_v5 }
 0x15e   :  { %1076 = vadd.xlane.f32.xlu1 %v1075_v23  ;;  %v2805_v23 = vsub.f32 %v2261_v39, %v1475_v21 }
 0x15f   :  { %v1081_v19 = vmul.f32 %v2297_v47, %v1080_v43 }
 0x161   :  { %v1082_v10 = vadd.f32 %v2297_v47, %v1081_v19  ;;  %v1527_v19 = vand.u32 4294901760, %v2805_v23 }
 0x163   :  { %v2767_v24 = vsel %vm1083_vm8, %v2297_v47, %v1082_v10 }
 0x1b9   :  { %v1068_v27 = vpop.xlane.xlu0 %1067 }
 0x1ba   :  { %v1085_v56 = vmul.f32 %v2767_v24, %v1068_v27 }
 0x1bc   :  { %v1089_v4 = vsub.f32 %v2757_v1, %v1085_v56 }
 0x1be   :  { %v1093_v53 = vmul.f32 %v1089_v4, %v1089_v4 }
 0x1c0   :  { %v1097_v14 = vsel %vm1065_vm12, %v1093_v53, 0.0 }
 0x1c1   :  { %1098 = vadd.xlane.f32.xlu2 %v1097_v14  ;;  %v1071_v40 = vpop.xlane.xlu0 %1070 }
 0x1c2   :  { %v1086_v2 = vmul.f32 %v2767_v24, %v1071_v40 }
 0x1c4   :  { %v2773_v60 = vsub.f32 %v1062_v31, %v1086_v2 }
 0x1c6   :  { %v1094_v46 = vmul.f32 %v2773_v60, %v2773_v60 }
 0x1c8   :  { %v1100_v51 = vsel %vm1065_vm12, %v1094_v46, 0.0 }
 0x1c9   :  { %v1074_v38 = vpop.xlane.xlu1 %1073  ;;  %1101 = vadd.xlane.f32.xlu2 %v1100_v51 }
 0x1ca   :  { %v1087_v45 = vmul.f32 %v2767_v24, %v1074_v38 }
 0x1cc   :  { %v2779_v26 = vsub.f32 %v1063_v58, %v1087_v45  ;;  %v2796_v58 = vld [vmem:[#allocation6] ss:$0 sm:$0xff] }
 0x1ce   :  { %v1095_v13 = vmul.f32 %v2779_v26, %v2779_v26 }
 0x1d0   :  { %v1103_v0 = vsel %vm1065_vm12, %v1095_v13, 0.0 }
 0x1d1   :  { %v1077_v50 = vpop.xlane.xlu1 %1076  ;;  %1104 = vadd.xlane.f32.xlu0 %v1103_v0 }
 0x1d2   :  { %v1088_v12 = vmul.f32 %v2767_v24, %v1077_v50 }
 0x1d4   :  { %v2785_v1 = vsub.f32 %v1064_v3, %v1088_v12 }
 0x1d6   :  { %v1096_v61 = vmul.f32 %v2785_v1, %v2785_v1 }
 0x1d8   :  { %v1106_v32 = vsel %vm1065_vm12, %v1096_v61, 0.0 }
 0x1d9   :  { %1107 = vadd.xlane.f32.xlu1 %v1106_v32 }
 0x234   :  { %v1099_v48 = vpop.xlane.xlu2 %1098 }
 0x235   :  { %v1109_v8 = vmul.f32 %v1099_v48, %v2767_v24 }
 0x237   :  { %v1113_v22 = vadd.f32 1e-05, %v1109_v8 }
 0x239   :  { %2298 = vrsqrt.f32 %v1113_v22  ;;  %vm1123_vm10 = vweird.f32 %v1113_v22 }
 0x23c   :  { %v1102_v33 = vpop.xlane.xlu2 %1101 }
 0x23d   :  { %v1110_v42 = vmul.f32 %v1102_v33, %v2767_v24 }
 0x23f   :  { %v2299_v31 = vpop.eup %2298  ;;  %v1114_v17 = vadd.f32 1e-05, %v1110_v42 }
 0x240   :  { %v1118_v54 = vmul.f32 %v2299_v31, %v1113_v22  ;;  %vm1124_vm9 = vweird.f32 %v2299_v31 }
 0x241   :  { %2300 = vrsqrt.f32 %v1114_v17  ;;  %vm1125_vm11 = vmor %vm1123_vm10, %vm1124_vm9  ;;  %vm1133_vm14 = vweird.f32 %v1114_v17 }
 0x242   :  { %v1119_v35 = vmul.f32 %v2299_v31, %v1118_v54 }
 0x244   :  { %v1120_v59 = vmul.f32 0.5, %v1119_v35  ;;  %v1105_v25 = vpop.xlane.xlu0 %1104 }
 0x245   :  { %v1111_v29 = vmul.f32 %v1105_v25, %v2767_v24 }
 0x246   :  { %v1121_v15 = vsub.f32 1.5, %v1120_v59 }
 0x247   :  { %v2301_v30 = vpop.eup %2300  ;;  %v1115_v11 = vadd.f32 1e-05, %v1111_v29 }
 0x248   :  { %v1122_v63 = vmul.f32 %v2299_v31, %v1121_v15  ;;  %v1128_v52 = vmul.f32 %v2301_v30, %v1114_v17  ;;  %vm1134_vm13 = vweird.f32 %v2301_v30 }
 0x249   :  { %2302 = vrsqrt.f32 %v1115_v11  ;;  %vm1135_vm15 = vmor %vm1133_vm14, %vm1134_vm13  ;;  %vm1143_vm8 = vweird.f32 %v1115_v11 }
 0x24a   :  { %v1126_v37 = vsel %vm1125_vm11, %v2299_v31, %v1122_v63  ;;  %v1129_v18 = vmul.f32 %v2301_v30, %v1128_v52 }
 0x24b   :  { %v1157_v49 = vmul.f32 %v1126_v37, %v1089_v4 }
 0x24c   :  { %v1130_v34 = vmul.f32 0.5, %v1129_v18  ;;  %v1108_v44 = vpop.xlane.xlu1 %1107 }
 0x24d   :  { %v1165_v57 = vmul.f32 %v2796_v58, %v1157_v49  ;;  %v1112_v3 = vmul.f32 %v1108_v44, %v2767_v24  ;;  %v1528_v24 = vsub.f32 %v2805_v23, %v1527_v19 }
 0x24e   :  { %v1131_v6 = vsub.f32 1.5, %v1130_v34 }
 0x24f   :  { %v2303_v47 = vpop.eup %2302  ;;  %v2808_v5 = vadd.f32 %v2801_v28, %v1165_v57  ;;  %v1116_v43 = vadd.f32 1e-05, %v1112_v3  ;;  %v1529_v2 = vand.u32 4294901760, %v1528_v24 }
 0x250   :  { %v1132_v10 = vmul.f32 %v2301_v30, %v1131_v6  ;;  %v1138_v27 = vmul.f32 %v2303_v47, %v1115_v11  ;;  %vm1144_vm2 = vweird.f32 %v2303_v47 }
 0x251   :  { %2304 = vrsqrt.f32 %v1116_v43  ;;  %v1183_v56 = vrot.slane %v2808_v5, 7  ;;  %1530 = vmatpush.msra.mxu1 %v1529_v2  ;;  %v1699_v42 = vrot.slane %v2808_v5, 6  ;;  %vm1153_vm10 = vweird.f32 %v1116_v43 }
 0x252   :  { %v1136_v4 = vsel %vm1135_vm15, %v2301_v30, %v1132_v10  ;;  %v1139_v53 = vmul.f32 %v2303_v47, %v1138_v27  ;;  %v1452_v44 = vsel %vm1065_vm12, %v2808_v5, 0 }
 0x253   :  { %v1158_v14 = vmul.f32 %v1136_v4, %v2773_v60  ;;  %v1194_v40 = vsel %vm156_vm1, 0.0, %v1183_v56  ;;  %v2860_v3 = vand.u32 4294901760, %v1452_v44 }
 0x254   :  { %v1140_v46 = vmul.f32 0.5, %v1139_v53  ;;  %v1195_v51 = vsel %vm2519_vm4, %v1194_v40, 0.0  ;;  %vm1145_vm4 = vmor %vm1143_vm8, %vm1144_vm2 }
 0x255   :  { %v1166_v38 = vmul.f32 %v2796_v58, %v1158_v14  ;;  %v1202_v45 = vsel %vm1065_vm12, %v1195_v51, 0  ;;  %v1478_v10 = vsub.f32 %v1452_v44, %v2860_v3 }
 0x256   :  { %v1141_v13 = vsub.f32 1.5, %v1140_v46  ;;  %v2819_v0 = vand.u32 4294901760, %v1202_v45 }
 0x257   :  { %v2305_v50 = vpop.eup %2304  ;;  %v2822_v12 = vadd.f32 %v2801_v28, %v1166_v38  ;;  %v1479_v53 = vand.u32 4294901760, %v1478_v10 }
 0x258   :  { %v1142_v60 = vmul.f32 %v2303_v47, %v1141_v13  ;;  %v1148_v61 = vmul.f32 %v2305_v50, %v1116_v43  ;;  %1285 = vmatmul.f32.vlgmr.msrb.gmra.mxu3 %v2819_v0  ;;  %v1231_v16 = vsub.f32 %v1202_v45, %v2819_v0  ;;  %vm1154_vm9 = vweird.f32 %v2305_v50 }
 0x259   :  { %v1184_v32 = vrot.slane %v2822_v12, 7  ;;  %1603 = vmatpush.msrb.mxu3 %v1475_v21  ;;  %v1700_v31 = vrot.slane %v2822_v12, 6  ;;  %vm1155_vm11 = vmor %vm1153_vm10, %vm1154_vm9  ;;  %v1480_v46 = vsub.f32 %v1478_v10, %v1479_v53 }
 0x25a   :  { %v1146_v36 = vsel %vm1145_vm4, %v2303_v47, %v1142_v60  ;;  %v1149_v7 = vmul.f32 %v2305_v50, %v1148_v61  ;;  %1321 = vmatmul.f32.vlgmr.msrb.gmra.mxu0 %v1231_v16  ;;  %v1232_v62 = vand.u32 4294901760, %v1231_v16 }
 0x25b   :  { %v1159_v20 = vmul.f32 %v1146_v36, %v2779_v26  ;;  %v1185_v48 = vsel %vm156_vm1, %v1183_v56, %v1184_v32  ;;  %1647 = vmatpush.msrb.mxu0 %v1527_v19  ;;  %v2840_v59 = vsel %vm693_vm5, %v1699_v42, %v1700_v31  ;;  %v1454_v56 = vsel %vm1065_vm12, %v2822_v12, 0 }
 0x25c   :  { %v1150_v55 = vmul.f32 0.5, %v1149_v7  ;;  %1360 = vmatmul.f32.vlgmr.msrb.gmra.mxu1 %v1232_v62  ;;  %v1233_v8 = vsub.f32 %v1231_v16, %v1232_v62  ;;  %v1205_v41 = vsel %vm1065_vm12, %v1185_v48, 0  ;;  %v1485_v14 = vand.u32 4294901760, %v1454_v56  ;;  %v1715_v62 = vld [vmem:[%s2970_s7] sm:$0xff] }
 0x25d   :  { %v1167_v22 = vmul.f32 %v2796_v58, %v1159_v20  ;;  %v2831_v33 = vand.u32 4294901760, %v1205_v41  ;;  %1681 = vmatpush.msrb.mxu1 %v1475_v21  ;;  %v1481_v13 = vand.u32 4294901760, %v1480_v46  ;;  %v1743_v20 = vand.u32 4294901760, %v1715_v62 }
 0x25e   :  { %v1151_v17 = vsub.f32 1.5, %v1150_v55  ;;  %v1234_v26 = vand.u32 4294901760, %v1233_v8  ;;  %v1486_v51 = vsub.f32 %v1454_v56, %v1485_v14 }
 0x25f   :  { %v1175_v54 = vadd.f32 %v2801_v28, %v1167_v22  ;;  %v1239_v35 = vsub.f32 %v1205_v41, %v2831_v33  ;;  %v1794_v48 = vsub.f32 %v1715_v62, %v1743_v20  ;;  %v3027_v62 = vld [vmem:[#allocation26_spill] sm:$0xff] }
 0x260   :  { %v1152_v25 = vmul.f32 %v2305_v50, %v1151_v17  ;;  %1235 = vmatmul.f32.vlgmr.msrb.gmra.mxu2 %v1234_v26  ;;  %1289 = vmatmul.f32.gmra.mxu3 %v2831_v33 }
 0x261   :  { %v1240_v29 = vand.u32 4294901760, %v1239_v35  ;;  %v1186_v15 = vrot.slane %v1175_v54, 7  ;;  %1565 = vmatpush.msrb.mxu2 %v2805_v23  ;;  %v1702_v11 = vrot.slane %v1175_v54, 6  ;;  %v1456_v45 = vsel %vm1065_vm12, %v1175_v54, 0 }
 0x262   :  { %v1156_v30 = vsel %vm1155_vm11, %v2305_v50, %v1152_v25  ;;  %1326 = vmatmul.f32.gmra.mxu0 %v1239_v35  ;;  %v1487_v50 = vand.u32 4294901760, %v1486_v51  ;;  %v1493_v12 = vand.u32 4294901760, %v1456_v45  ;;  %v1795_v41 = vand.u32 4294901760, %v1794_v48 }
 0x263   :  { %v1160_v63 = vmul.f32 %v1156_v30, %v2785_v1  ;;  %v1241_v52 = vsub.f32 %v1239_v35, %v1240_v29  ;;  %v1187_v37 = vsel %vm156_vm1, %v1184_v32, %v1186_v15  ;;  %v2849_v39 = vsel %vm693_vm5, %v1700_v31, %v1702_v11  ;;  %v3030_v35 = vld [vmem:[#allocation24_spill] sm:$0xff] }
 0x264   :  { %1366 = vmatmul.f32.gmra.mxu1 %v1240_v29  ;;  %v1197_v18 = vsel %vm2500_vm3, %v1187_v37, 0.0  ;;  %v1488_v60 = vsub.f32 %v1486_v51, %v1487_v50  ;;  %v1494_v61 = vsub.f32 %v1456_v45, %v1493_v12  ;;  %v1997_v29 = vld [vmem:[%s2971_s8] sm:$0xf] }
 0x265   :  { %v1168_v49 = vmul.f32 %v2796_v58, %v1160_v63  ;;  %v1242_v21 = vand.u32 4294901760, %v1241_v52  ;;  %v1208_v34 = vsel %vm1065_vm12, %v1197_v18, 0  ;;  %v1999_v30 = vsel %vm196_vm0, %v1997_v29, 0 }
 0x266   :  { %v2855_v57 = vand.u32 4294901760, %v1208_v34  ;;  %v1489_v32 = vand.u32 4294901760, %v1488_v60  ;;  %v1495_v36 = vand.u32 4294901760, %v1494_v61  ;;  %v1720_v18 = vsel %vm1065_vm12, %v2840_v59, 0 }
 0x267   :  { %v1176_v1 = vadd.f32 %v2801_v28, %v1168_v49 }
 0x268   :  { %1243 = vmatmul.f32.gmra.mxu2 %v1242_v21  ;;  %1293 = vmatmul.f32.gmra.mxu3 %v2855_v57  ;;  %v1247_v9 = vsub.f32 %v1208_v34, %v2855_v57  ;;  %v1496_v55 = vsub.f32 %v1494_v61, %v1495_v36  ;;  %v1753_v34 = vand.u32 4294901760, %v1720_v18 }
 0x269   :  { %v1188_v23 = vrot.slane %v1176_v1, 7  ;;  %v1704_v6 = vrot.slane %v1176_v1, 6  ;;  %v1458_v16 = vsel %vm1065_vm12, %v1176_v1, 0 }
 0x26a   :  { %1331 = vmatmul.f32.gmra.mxu0 %v1247_v9  ;;  %v1248_v58 = vand.u32 4294901760, %v1247_v9  ;;  %v1501_v7 = vand.u32 4294901760, %v1458_v16  ;;  %v1497_v22 = vand.u32 4294901760, %v1496_v55 }
 0x26b   :  { %v1189_v47 = vsel %vm156_vm1, %v1186_v15, %v1188_v23  ;;  %v2864_v43 = vsel %vm693_vm5, %v1702_v11, %v1704_v6  ;;  %v2016_v11 = vand.u32 4294901760, %v1999_v30 }
 0x26c   :  { %1372 = vmatmul.f32.gmra.mxu1 %v1248_v58  ;;  %v1249_v19 = vsub.f32 %v1247_v9, %v1248_v58  ;;  %v1211_v28 = vsel %vm1065_vm12, %v1189_v47, 0  ;;  %v1502_v8 = vsub.f32 %v1458_v16, %v1501_v7  ;;  %v1754_v9 = vsub.f32 %v1720_v18, %v1753_v34  ;;  %v3032_v18 = vld [vmem:[#allocation13_spill] sm:$0xff] }
 0x26d   :  { %v1254_v27 = vand.u32 4294901760, %v1211_v28  ;;  %v2067_v5 = vsub.f32 %v1999_v30, %v2016_v11 }
 0x26e   :  { %v1250_v24 = vand.u32 4294901760, %v1249_v19  ;;  %v1503_v31 = vand.u32 4294901760, %v1502_v8  ;;  %v1755_v23 = vand.u32 4294901760, %v1754_v9 }
 0x26f   :  { %v1255_v4 = vsub.f32 %v1211_v28, %v1254_v27 }
 0x270   :  { %1251 = vmatmul.f32.gmra.mxu2 %v1250_v24  ;;  %1297 = vmatmul.f32.gmra.mxu3 %v1254_v27  ;;  %v1504_v26 = vsub.f32 %v1502_v8, %v1503_v31  ;;  %v1756_v58 = vsub.f32 %v1754_v9, %v1755_v23 }
 0x271   :  { %v1256_v40 = vand.u32 4294901760, %v1255_v4 }
 0x272   :  { %1336 = vmatmul.f32.gmra.mxu0 %v1255_v4  ;;  %v1505_v54 = vand.u32 4294901760, %v1504_v26  ;;  %v1757_v19 = vand.u32 4294901760, %v1756_v58 }
 0x273   :  { %v1257_v2 = vsub.f32 %v1255_v4, %v1256_v40 }
 0x274   :  { %1378 = vmatmul.f32.gmra.mxu1 %v1256_v40 }
 0x275   :  { %v1258_v38 = vand.u32 4294901760, %v1257_v2  ;;  %v3023_v2 = vld [vmem:[#allocation17_spill] sm:$0xff] }
 0x278   :  { %1259 = vmatmul.f32.gmra.mxu2 %v1258_v38  ;;  %1436 = vmatmul.f32.vlgmr.msra.gmra.mxu3 %v2819_v0 }
 0x27a   :  { %1482 = vmatmul.f32.vlgmr.msra.gmra.mxu0 %v1481_v13  ;;  %v3025_v13 = vld [vmem:[#allocation22_spill] sm:$0xff] }
 0x27b   :  { %1833 = vmatpush.msra.mxu0 %v1794_v48 }
 0x27c   :  { %1532 = vmatmul.f32.vlgmr.msra.gmra.mxu1 %v2860_v3 }
 0x27d   :  { %1871 = vmatpush.msra.mxu1 %v1743_v20 }
 0x280   :  { %1402 = vmatmul.f32.vlgmr.msra.gmra.mxu2 %v2819_v0  ;;  %1440 = vmatmul.f32.gmra.mxu3 %v2831_v33  ;;  %v1796_v0 = vsub.f32 %v1794_v48, %v1795_v41 }
 0x281   :  { %1744 = vmatpush.msra.mxu2 %v1743_v20 }
 0x282   :  { %1490 = vmatmul.f32.gmra.mxu0 %v1489_v32  ;;  %v1797_v17 = vand.u32 4294901760, %v1796_v0 }
 0x284   :  { %1536 = vmatmul.f32.gmra.mxu1 %v1485_v14  ;;  %1798 = vmatpush.msra.mxu3 %v1797_v17  ;;  %v3029_v17 = vld [vmem:[#allocation28_spill] sm:$0xff] }
 0x288   :  { %1406 = vmatmul.f32.gmra.mxu2 %v2831_v33  ;;  %1444 = vmatmul.f32.gmra.mxu3 %v2855_v57  ;;  %v1710_v33 = vsel %vm693_vm5, 0.0, %v1699_v42  ;;  %v2068_v42 = vand.u32 4294901760, %v2067_v5 }
 0x289   :  { %v1711_v25 = vsel %vm2603_vm6, %v1710_v33, 0.0 }
 0x28a   :  { %1498 = vmatmul.f32.gmra.mxu0 %v1497_v22  ;;  %v1717_v15 = vsel %vm1065_vm12, %v1711_v25, 0  ;;  %v2069_v37 = vsub.f32 %v2067_v5, %v2068_v42 }
 0x28b   :  { %v1745_v63 = vand.u32 4294901760, %v1717_v15 }
 0x28c   :  { %1540 = vmatmul.f32.gmra.mxu1 %v1493_v12  ;;  %v2070_v49 = vand.u32 4294901760, %v2069_v37 }
 0x28d   :  { %v1746_v52 = vsub.f32 %v1717_v15, %v1745_v63  ;;  %v3031_v15 = vld [vmem:[#allocation14_spill] sm:$0xff] }
 0x28f   :  { %v1747_v21 = vand.u32 4294901760, %v1746_v52 }
 0x290   :  { %1410 = vmatmul.f32.gmra.mxu2 %v2855_v57  ;;  %1448 = vmatmul.f32.gmra.mxu3 %v1254_v27  ;;  %v1713_v57 = vsel %vm2646_vm7, %v2849_v39, 0.0  ;;  %v1726_v39 = vsel %vm1065_vm12, %v2864_v43, 0 }
 0x291   :  { %v1748_v1 = vsub.f32 %v1746_v52, %v1747_v21 }
 0x292   :  { %1506 = vmatmul.f32.gmra.mxu0 %v1505_v54 }
 0x293   :  { %v1749_v59 = vand.u32 4294901760, %v1748_v1 }
 0x294   :  { %1544 = vmatmul.f32.gmra.mxu1 %v1501_v7 }
 0x298   :  { %1414 = vmatmul.f32.gmra.mxu2 %v1254_v27  ;;  %1607 = vmatmul.f32.vlgmr.msrb.gmra.mxu3 %v1479_v53 }
 0x299   :  { %1949 = vmatpush.msrb.mxu3 %v1743_v20 }
 0x29a   :  { %1649 = vmatmul.f32.vlgmr.msrb.gmra.mxu0 %v2860_v3 }
 0x29b   :  { %2017 = vmatpush.msrb.mxu0 %v2016_v11 }
 0x29c   :  { %1683 = vmatmul.f32.vlgmr.msrb.gmra.mxu1 %v2860_v3  ;;  %v1723_v3 = vsel %vm1065_vm12, %v1713_v57, 0 }
 0x29d   :  { %2071 = vmatpush.msrb.mxu1 %v2070_v49  ;;  %v1761_v6 = vand.u32 4294901760, %v1723_v3  ;;  %v3033_v49 = vld [vmem:[#allocation18_spill] sm:$0xff] }
 0x29f   :  { %v1762_v47 = vsub.f32 %v1723_v3, %v1761_v6 }
 0x2a0   :  { %1568 = vmatmul.f32.vlgmr.msrb.gmra.mxu2 %v1478_v10  ;;  %1613 = vmatmul.f32.gmra.mxu3 %v1487_v50  ;;  %v1769_v10 = vand.u32 4294901760, %v1726_v39 }
 0x2a1   :  { %1915 = vmatpush.msrb.mxu2 %v1795_v41  ;;  %v1763_v28 = vand.u32 4294901760, %v1762_v47 }
 0x2a2   :  { %1653 = vmatmul.f32.gmra.mxu0 %v1485_v14  ;;  %v1770_v56 = vsub.f32 %v1726_v39, %v1769_v10 }
 0x2a3   :  { %v1764_v27 = vsub.f32 %v1762_v47, %v1763_v28 }
 0x2a4   :  { %1687 = vmatmul.f32.gmra.mxu1 %v1485_v14  ;;  %v1771_v4 = vand.u32 4294901760, %v1770_v56 }
 0x2a5   :  { %v1765_v24 = vand.u32 4294901760, %v1764_v27 }
 0x2a6   :  { %v1772_v53 = vsub.f32 %v1770_v56, %v1771_v4 }
 0x2a8   :  { %1573 = vmatmul.f32.gmra.mxu2 %v1486_v51  ;;  %1619 = vmatmul.f32.gmra.mxu3 %v1495_v36  ;;  %v1773_v14 = vand.u32 4294901760, %v1772_v53  ;;  %v3024_v51 = vld [vmem:[#allocation12_spill] sm:$0xff] }
 0x2aa   :  { %1657 = vmatmul.f32.gmra.mxu0 %v1493_v12 }
 0x2ac   :  { %1691 = vmatmul.f32.gmra.mxu1 %v1493_v12 }
 0x2b0   :  { %1578 = vmatmul.f32.gmra.mxu2 %v1494_v61  ;;  %1625 = vmatmul.f32.gmra.mxu3 %v1503_v31  ;;  %v3026_v61 = vld [vmem:[#allocation15_spill] sm:$0xff] }
 0x2b2   :  { %1661 = vmatmul.f32.gmra.mxu0 %v1501_v7 }
 0x2b4   :  { %1695 = vmatmul.f32.gmra.mxu1 %v1501_v7 }
 0x2b8   :  { %1583 = vmatmul.f32.gmra.mxu2 %v1502_v8  ;;  %1800 = vmatmul.f32.vlgmr.msra.gmra.mxu3 %v1745_v63  ;;  %v3028_v8 = vld [vmem:[#allocation19_spill] sm:$0xff] }
 0x2b9   :  { %2144 = vmatpush.msra.mxu3 %v2016_v11 }
 0x2ba   :  { %1836 = vmatmul.f32.vlgmr.msra.gmra.mxu0 %v1746_v52 }
 0x2bb   :  { %2188 = vmatpush.msra.mxu0 %v2068_v42 }
 0x2bc   :  { %1875 = vmatmul.f32.vlgmr.msra.gmra.mxu1 %v1747_v21 }
 0x2bd   :  { %2222 = vmatpush.msra.mxu1 %v2016_v11 }
 0x2c0   :  { %1750 = vmatmul.f32.vlgmr.msra.gmra.mxu2 %v1749_v59  ;;  %1804 = vmatmul.f32.gmra.mxu3 %v1753_v34  ;;  %v3034_v59 = vld [vmem:[#allocation16_spill] sm:$0xff] }
 0x2c1   :  { %2106 = vmatpush.msra.mxu2 %v2067_v5 }
 0x2c2   :  { %1841 = vmatmul.f32.gmra.mxu0 %v1754_v9 }
 0x2c4   :  { %1881 = vmatmul.f32.gmra.mxu1 %v1755_v23  ;;  %v3035_v23 = vld [vmem:[#allocation23_spill] sm:$0xff] }
 0x2c8   :  { %1758 = vmatmul.f32.gmra.mxu2 %v1757_v19  ;;  %1808 = vmatmul.f32.gmra.mxu3 %v1761_v6 }
 0x2ca   :  { %1846 = vmatmul.f32.gmra.mxu0 %v1762_v47 }
 0x2cc   :  { %1887 = vmatmul.f32.gmra.mxu1 %v1763_v28 }
 0x2d0   :  { %1766 = vmatmul.f32.gmra.mxu2 %v1765_v24  ;;  %1812 = vmatmul.f32.gmra.mxu3 %v1769_v10  ;;  %v3037_v24 = vld [vmem:[#allocation27_spill] sm:$0xff] }
 0x2d2   :  { %1851 = vmatmul.f32.gmra.mxu0 %v1770_v56  ;;  %v3036_v56 = vld [vmem:[#allocation20_spill] sm:$0xff] }
 0x2d4   :  { %1893 = vmatmul.f32.gmra.mxu1 %v1771_v4 }
 0x2d7   :  { %v1322_v40 = vpop.f32.mrf.mxu0 }
 0x2d8   :  { %1774 = vmatmul.f32.gmra.mxu2 %v1773_v14  ;;  %1951 = vmatmul.f32.vlgmr.msrb.gmra.mxu3 %v1745_v63 }
 0x2d9   :  { %v1361_v43 = vpop.f32.mrf.mxu1 }
 0x2da   :  { %2023 = vmatmul.f32.vlgmr.msrb.gmra.mxu0 %v3023_v2 }
 0x2db   :  { %v1286_v46 = vpop.f32.mrf.mxu3 }
 0x2dc   :  { %2073 = vmatmul.f32.vlgmr.msrb.gmra.mxu1 %v3024_v51 }
 0x2df   :  { %v1327_v38 = vpop.f32.mrf.mxu0 }
 0x2e0   :  { %1917 = vmatmul.f32.vlgmr.msrb.gmra.mxu2 %v1745_v63  ;;  %1955 = vmatmul.f32.gmra.mxu3 %v1753_v34 }
 0x2e1   :  { %v1367_v45 = vpop.f32.mrf.mxu1 }
 0x2e2   :  { %2031 = vmatmul.f32.gmra.mxu0 %v3025_v13 }
 0x2e3   :  { %v1236_v50 = vpop.f32.mrf.mxu2  ;;  %v1290_v12 = vpop.f32.mrf.mxu3 }
 0x2e4   :  { %v1287_v60 = vadd.f32 %v1286_v46, %v1236_v50  ;;  %2077 = vmatmul.f32.gmra.mxu1 %v3026_v61 }
 0x2e6   :  { %v1323_v16 = vadd.f32 %v1322_v40, %v1287_v60 }
 0x2e7   :  { %v1332_v32 = vpop.f32.mrf.mxu0 }
 0x2e8   :  { %1921 = vmatmul.f32.gmra.mxu2 %v1753_v34  ;;  %1959 = vmatmul.f32.gmra.mxu3 %v1761_v6  ;;  %v1362_v36 = vadd.f32 %v1361_v43, %v1323_v16 }
 0x2e9   :  { %v1373_v7 = vpop.f32.mrf.mxu1 }
 0x2ea   :  { %2039 = vmatmul.f32.gmra.mxu0 %v3027_v62 }
 0x2eb   :  { %v1244_v20 = vpop.f32.mrf.mxu2  ;;  %v1294_v48 = vpop.f32.mrf.mxu3 }
 0x2ec   :  { %v1291_v55 = vadd.f32 %v1290_v12, %v1244_v20  ;;  %2081 = vmatmul.f32.gmra.mxu1 %v3028_v8 }
 0x2ee   :  { %v1328_v41 = vadd.f32 %v1327_v38, %v1291_v55  ;;  %v3038_v38 = vld [vmem:[#allocation25_spill] sm:$0xff] }
 0x2ef   :  { %v1337_v0 = vpop.f32.mrf.mxu0 }
 0x2f0   :  { %1925 = vmatmul.f32.gmra.mxu2 %v1761_v6  ;;  %1963 = vmatmul.f32.gmra.mxu3 %v1769_v10  ;;  %v1368_v22 = vadd.f32 %v1367_v45, %v1328_v41 }
 0x2f1   :  { %v1379_v31 = vpop.f32.mrf.mxu1 }
 0x2f2   :  { %2047 = vmatmul.f32.gmra.mxu0 %v3029_v17 }
 0x2f3   :  { %v1252_v26 = vpop.f32.mrf.mxu2  ;;  %v1298_v54 = vpop.f32.mrf.mxu3 }
 0x2f4   :  { %v1295_v33 = vadd.f32 %v1294_v48, %v1252_v26  ;;  %2085 = vmatmul.f32.gmra.mxu1 %v3030_v35 }
 0x2f6   :  { %v1333_v25 = vadd.f32 %v1332_v32, %v1295_v33 }
 0x2f7   :  { %v1483_v29 = vpop.f32.mrf.mxu0 }
 0x2f8   :  { %1929 = vmatmul.f32.gmra.mxu2 %v1769_v10  ;;  %2148 = vmatmul.f32.vlgmr.msra.gmra.mxu3 %v3031_v15  ;;  %v1374_v30 = vadd.f32 %v1373_v7, %v1333_v25 }
 0x2f9   :  { %v1533_v11 = vpop.f32.mrf.mxu1 }
 0x2fa   :  { %2190 = vmatmul.f32.vlgmr.msra.gmra.mxu0 %v3024_v51 }
 0x2fb   :  { %v1260_v63 = vpop.f32.mrf.mxu2  ;;  %v1437_v5 = vpop.f32.mrf.mxu3 }
 0x2fc   :  { %v1299_v42 = vadd.f32 %v1298_v54, %v1260_v63  ;;  %2224 = vmatmul.f32.vlgmr.msra.gmra.mxu1 %v3024_v51 }
 0x2fe   :  { %v1338_v52 = vadd.f32 %v1337_v0, %v1299_v42 }
 0x2ff   :  { %v1491_v37 = vpop.f32.mrf.mxu0 }
 0x300   :  { %2109 = vmatmul.f32.vlgmr.msra.gmra.mxu2 %v3032_v18  ;;  %2154 = vmatmul.f32.gmra.mxu3 %v3033_v49  ;;  %v1380_v21 = vadd.f32 %v1379_v31, %v1338_v52 }
 0x301   :  { %v1537_v34 = vpop.f32.mrf.mxu1 }
 0x302   :  { %2194 = vmatmul.f32.gmra.mxu0 %v3026_v61 }
 0x303   :  { %v1403_v44 = vpop.f32.mrf.mxu2  ;;  %v1441_v57 = vpop.f32.mrf.mxu3 }
 0x304   :  { %v1404_v1 = vadd.f32 %v1403_v44, %v1362_v36  ;;  %2228 = vmatmul.f32.gmra.mxu1 %v3026_v61 }
 0x306   :  { %v1438_v9 = vadd.f32 %v1437_v5, %v1404_v1 }
 0x307   :  { %v1499_v3 = vpop.f32.mrf.mxu0 }
 0x308   :  { %2114 = vmatmul.f32.gmra.mxu2 %v3034_v59  ;;  %2160 = vmatmul.f32.gmra.mxu3 %v3035_v23  ;;  %v1484_v6 = vadd.f32 %v1483_v29, %v1438_v9 }
 0x309   :  { %v1541_v58 = vpop.f32.mrf.mxu1 }
 0x30a   :  { %2198 = vmatmul.f32.gmra.mxu0 %v3028_v8  ;;  %v1534_v47 = vadd.f32 %v1533_v11, %v1484_v6 }
 0x30b   :  { %v1407_v39 = vpop.f32.mrf.mxu2  ;;  %v1445_v19 = vpop.f32.mrf.mxu3 }
 0x30c   :  { %v1408_v28 = vadd.f32 %v1407_v39, %v1368_v22  ;;  %2232 = vmatmul.f32.gmra.mxu1 %v3028_v8 }
 0x30e   :  { %v1442_v10 = vadd.f32 %v1441_v57, %v1408_v28 }
 0x30f   :  { %v1507_v27 = vpop.f32.mrf.mxu0 }
 0x310   :  { %2119 = vmatmul.f32.gmra.mxu2 %v3036_v56  ;;  %2166 = vmatmul.f32.gmra.mxu3 %v3037_v24  ;;  %v1492_v4 = vadd.f32 %v1491_v37, %v1442_v10 }
 0x311   :  { %v1545_v53 = vpop.f32.mrf.mxu1 }
 0x312   :  { %2202 = vmatmul.f32.gmra.mxu0 %v3030_v35  ;;  %v1538_v14 = vadd.f32 %v1537_v34, %v1492_v4 }
 0x313   :  { %v1411_v40 = vpop.f32.mrf.mxu2  ;;  %v1449_v43 = vpop.f32.mrf.mxu3 }
 0x314   :  { %v1412_v2 = vadd.f32 %v1411_v40, %v1374_v30  ;;  %2236 = vmatmul.f32.gmra.mxu1 %v3030_v35 }
 0x316   :  { %v1446_v46 = vadd.f32 %v1445_v19, %v1412_v2 }
 0x317   :  { %v1650_v51 = vpop.f32.mrf.mxu0 }
 0x318   :  { %2124 = vmatmul.f32.gmra.mxu2 %v3038_v38  ;;  %v1500_v45 = vadd.f32 %v1499_v3, %v1446_v46 }
 0x319   :  { %v1684_v13 = vpop.f32.mrf.mxu1 }
 0x31a   :  { %v1542_v50 = vadd.f32 %v1541_v58, %v1500_v45 }
 0x31b   :  { %v1415_v12 = vpop.f32.mrf.mxu2  ;;  %v1608_v60 = vpop.f32.mrf.mxu3 }
 0x31c   :  { %v1416_v61 = vadd.f32 %v1415_v12, %v1380_v21 }
 0x31e   :  { %v1450_v16 = vadd.f32 %v1449_v43, %v1416_v61 }
 0x31f   :  { %v1654_v32 = vpop.f32.mrf.mxu0 }
 0x320   :  { %v1508_v36 = vadd.f32 %v1507_v27, %v1450_v16 }
 0x321   :  { %v1688_v7 = vpop.f32.mrf.mxu1 }
 0x322   :  { %v1546_v62 = vadd.f32 %v1545_v53, %v1508_v36 }
 0x323   :  { %v1569_v20 = vpop.f32.mrf.mxu2  ;;  %v1614_v48 = vpop.f32.mrf.mxu3 }
 0x324   :  { %v1570_v55 = vadd.f32 %v1569_v20, %v1534_v47 }
 0x326   :  { %v1609_v8 = vadd.f32 %v1608_v60, %v1570_v55 }
 0x327   :  { %v1658_v41 = vpop.f32.mrf.mxu0 }
 0x328   :  { %v1651_v0 = vadd.f32 %v1650_v51, %v1609_v8 }
 0x329   :  { %v1692_v22 = vpop.f32.mrf.mxu1 }
 0x32a   :  { %v2926_v31 = vadd.f32 %v1684_v13, %v1651_v0 }
 0x32b   :  { %v1574_v17 = vpop.f32.mrf.mxu2  ;;  %v1620_v26 = vpop.f32.mrf.mxu3 }
 0x32c   :  { %v1575_v54 = vadd.f32 %v1574_v17, %v1538_v14 }
 0x32e   :  { %v1615_v33 = vadd.f32 %v1614_v48, %v1575_v54 }
 0x32f   :  { %v1662_v35 = vpop.f32.mrf.mxu0 }
 0x330   :  { %v1655_v25 = vadd.f32 %v1654_v32, %v1615_v33  ;;  %v2276_v33 = vld [vmem:[%s2964_s1] ss:$0 sm:$0xff] }
 0x331   :  { %v1696_v29 = vpop.f32.mrf.mxu1 }
 0x332   :  { %v2928_v15 = vadd.f32 %v1688_v7, %v1655_v25 }
 0x333   :  { %v1579_v30 = vpop.f32.mrf.mxu2  ;;  %v1626_v11 = vpop.f32.mrf.mxu3 }
 0x334   :  { %v1580_v63 = vadd.f32 %v1579_v30, %v1542_v50 }
 0x336   :  { %v1621_v5 = vadd.f32 %v1620_v26, %v1580_v63 }
 0x337   :  { %v1837_v42 = vpop.f32.mrf.mxu0 }
 0x338   :  { %v1659_v52 = vadd.f32 %v1658_v41, %v1621_v5  ;;  %v2277_v5 = vld [vmem:[#allocation2] ss:$0 sm:$0xff] }
 0x339   :  { %v1876_v37 = vpop.f32.mrf.mxu1 }
 0x33a   :  { %v2930_v18 = vadd.f32 %v1692_v22, %v1659_v52 }
 0x33b   :  { %v1584_v49 = vpop.f32.mrf.mxu2  ;;  %v1801_v21 = vpop.f32.mrf.mxu3 }
 0x33c   :  { %v1585_v34 = vadd.f32 %v1584_v49, %v1546_v62 }
 0x33e   :  { %v1627_v44 = vadd.f32 %v1626_v11, %v1585_v34 }
 0x33f   :  { %v1842_v57 = vpop.f32.mrf.mxu0 }
 0x340   :  { %v1663_v1 = vadd.f32 %v1662_v35, %v1627_v44 }
 0x341   :  { %v1882_v9 = vpop.f32.mrf.mxu1 }
 0x342   :  { %v2932_v3 = vadd.f32 %v1696_v29, %v1663_v1 }
 0x343   :  { %v1751_v59 = vpop.f32.mrf.mxu2  ;;  %v1805_v23 = vpop.f32.mrf.mxu3 }
 0x344   :  { %v1802_v13 = vadd.f32 %v1801_v21, %v1751_v59 }
 0x346   :  { %v1838_v12 = vadd.f32 %v1837_v42, %v1802_v13 }
 0x347   :  { %v1847_v6 = vpop.f32.mrf.mxu0 }
 0x348   :  { %v1877_v32 = vadd.f32 %v1876_v37, %v1838_v12 }
 0x349   :  { %v1888_v58 = vpop.f32.mrf.mxu1 }
 0x34b   :  { %v1759_v47 = vpop.f32.mrf.mxu2  ;;  %v1809_v39 = vpop.f32.mrf.mxu3 }
 0x34c   :  { %v1806_v16 = vadd.f32 %v1805_v23, %v1759_v47 }
 0x34e   :  { %v1843_v20 = vadd.f32 %v1842_v57, %v1806_v16 }
 0x34f   :  { %v1852_v19 = vpop.f32.mrf.mxu0 }
 0x350   :  { %v1883_v0 = vadd.f32 %v1882_v9, %v1843_v20 }
 0x351   :  { %v1894_v28 = vpop.f32.mrf.mxu1 }
 0x353   :  { %v1767_v10 = vpop.f32.mrf.mxu2  ;;  %v1813_v27 = vpop.f32.mrf.mxu3 }
 0x354   :  { %v1810_v41 = vadd.f32 %v1809_v39, %v1767_v10 }
 0x356   :  { %v1848_v25 = vadd.f32 %v1847_v6, %v1810_v41 }
 0x357   :  { %v2024_v56 = vpop.f32.mrf.mxu0 }
 0x358   :  { %v1889_v37 = vadd.f32 %v1888_v58, %v1848_v25 }
 0x359   :  { %v2074_v24 = vpop.f32.mrf.mxu1 }
 0x35a   :  { %v2075_v26 = vadd.f32 %v2074_v24, %v2024_v56 }
 0x35b   :  { %v1775_v4 = vpop.f32.mrf.mxu2  ;;  %v1952_v53 = vpop.f32.mrf.mxu3 }
 0x35c   :  { %v1814_v52 = vadd.f32 %v1813_v27, %v1775_v4 }
 0x35e   :  { %v1853_v23 = vadd.f32 %v1852_v19, %v1814_v52  ;;  %v2278_v19 = vld [vmem:[%s2964_s1 + $0x1] ss:$0 sm:$0xff] }
 0x35f   :  { %v2032_v14 = vpop.f32.mrf.mxu0 }
 0x360   :  { %v1895_v27 = vadd.f32 %v1894_v28, %v1853_v23 }
 0x361   :  { %v2078_v2 = vpop.f32.mrf.mxu1 }
 0x362   :  { %v2079_v21 = vadd.f32 %v2078_v2, %v2032_v14 }
 0x363   :  { %v1918_v40 = vpop.f32.mrf.mxu2  ;;  %v1956_v43 = vpop.f32.mrf.mxu3 }
 0x364   :  { %v1919_v7 = vadd.f32 %v1918_v40, %v1877_v32 }
 0x366   :  { %v1953_v55 = vadd.f32 %v1952_v53, %v1919_v7 }
 0x367   :  { %v2040_v46 = vpop.f32.mrf.mxu0 }
 0x368   :  { %v1967_v17 = vadd.f32 %v1953_v55, %v2926_v31 }
 0x369   :  { %v2082_v45 = vpop.f32.mrf.mxu1 }
 0x36a   :  { %v1980_v63 = vmul.f32 %v2276_v33, %v1967_v17  ;;  %v2083_v24 = vadd.f32 %v2082_v45, %v2040_v46  ;;  %v2279_v46 = vld [vmem:[#allocation2 + $0x1] ss:$0 sm:$0xff] }
 0x36b   :  { %v1922_v51 = vpop.f32.mrf.mxu2  ;;  %v1960_v38 = vpop.f32.mrf.mxu3 }
 0x36c   :  { %v1923_v54 = vadd.f32 %v1922_v51, %v1883_v0  ;;  %v1993_v57 = vadd.f32 %v2277_v5, %v1980_v63 }
 0x36e   :  { %v1957_v30 = vadd.f32 %v1956_v43, %v1923_v54 }
 0x36f   :  { %v2934_v61 = vpop.f32.mrf.mxu0 }
 0x370   :  { %v1968_v31 = vadd.f32 %v1957_v30, %v2928_v15 }
 0x371   :  { %v2086_v36 = vpop.f32.mrf.mxu1 }
 0x372   :  { %v1981_v10 = vmul.f32 %v2276_v33, %v1968_v31  ;;  %v2087_v16 = vadd.f32 %v2086_v36, %v2934_v61 }
 0x373   :  { %v1926_v50 = vpop.f32.mrf.mxu2  ;;  %v1964_v60 = vpop.f32.mrf.mxu3 }
 0x374   :  { %v1927_v44 = vadd.f32 %v1926_v50, %v1889_v37  ;;  %v1994_v14 = vadd.f32 %v2277_v5, %v1981_v10 }
 0x376   :  { %v1961_v39 = vadd.f32 %v1960_v38, %v1927_v44 }
 0x377   :  { %v2191_v8 = vpop.f32.mrf.mxu0 }
 0x378   :  { %v1969_v4 = vadd.f32 %v1961_v39, %v2930_v18 }
 0x379   :  { %v2225_v22 = vpop.f32.mrf.mxu1 }
 0x37a   :  { %v1982_v18 = vmul.f32 %v2278_v19, %v1969_v4 }
 0x37b   :  { %v1930_v62 = vpop.f32.mrf.mxu2  ;;  %v2149_v48 = vpop.f32.mrf.mxu3 }
 0x37c   :  { %v1931_v53 = vadd.f32 %v1930_v62, %v1895_v27  ;;  %v1995_v32 = vadd.f32 %v2279_v46, %v1982_v18 }
 0x37e   :  { %v1965_v50 = vadd.f32 %v1964_v60, %v1931_v53 }
 0x37f   :  { %v2195_v34 = vpop.f32.mrf.mxu0 }
 0x380   :  { %v1970_v12 = vadd.f32 %v1965_v50, %v2932_v3 }
 0x381   :  { %v2229_v59 = vpop.f32.mrf.mxu1 }
 0x382   :  { %v1983_v41 = vmul.f32 %v2278_v19, %v1970_v12 }
 0x383   :  { %v2110_v35 = vpop.f32.mrf.mxu2  ;;  %v2155_v42 = vpop.f32.mrf.mxu3 }
 0x384   :  { %v2111_v29 = vadd.f32 %v2110_v35, %v2075_v26  ;;  %v1996_v17 = vadd.f32 %v2279_v46, %v1983_v41 }
 0x386   :  { %v2150_v11 = vadd.f32 %v2149_v48, %v2111_v29 }
 0x387   :  { %v2199_v2 = vpop.f32.mrf.mxu0 }
 0x388   :  { %v2192_v49 = vadd.f32 %v2191_v8, %v2150_v11 }
 0x389   :  { %v2233_v13 = vpop.f32.mrf.mxu1 }
 0x38a   :  { %v2226_v1 = vadd.f32 %v2225_v22, %v2192_v49 }
 0x38b   :  { %v2115_v9 = vpop.f32.mrf.mxu2  ;;  %v2161_v15 = vpop.f32.mrf.mxu3 }
 0x38c   :  { %v2240_v6 = vadd.f32 %v2226_v1, %v1993_v57  ;;  %v2116_v47 = vadd.f32 %v2115_v9, %v2079_v21 }
 0x38e   :  { %2244 = vst.msk [vmem:[%s2972_s9] sm:$0xff] %vm1065_vm12, %v2240_v6  ;;  %v2156_v58 = vadd.f32 %v2155_v42, %v2116_v47 }
 0x38f   :  { %v2203_v60 = vpop.f32.mrf.mxu0 }
 0x390   :  { %v2196_v56 = vadd.f32 %v2195_v34, %v2156_v58 }
 0x391   :  { %v2237_v0 = vpop.f32.mrf.mxu1 }
 0x392   :  { %v2230_v40 = vadd.f32 %v2229_v59, %v2196_v56 }
 0x393   :  { %v2120_v43 = vpop.f32.mrf.mxu2  ;;  %v2167_v20 = vpop.f32.mrf.mxu3 }
 0x394   :  { %v2241_v51 = vadd.f32 %v2230_v40, %v1994_v14  ;;  %v2121_v38 = vadd.f32 %v2120_v43, %v2083_v24 }
 0x396   :  { %2245 = vst.msk [vmem:[%s2972_s9 + $0x8] sm:$0xff] %vm1065_vm12, %v2241_v51  ;;  %v2162_v28 = vadd.f32 %v2161_v15, %v2121_v38 }
 0x398   :  { %v2200_v45 = vadd.f32 %v2199_v2, %v2162_v28 }
 0x39a   :  { %v2234_v7 = vadd.f32 %v2233_v13, %v2200_v45 }
 0x39b   :  { %v2125_v62 = vpop.f32.mrf.mxu2 }
 0x39c   :  { %v2242_v48 = vadd.f32 %v2234_v7, %v1995_v32  ;;  %v2126_v55 = vadd.f32 %v2125_v62, %v2087_v16 }
 0x39e   :  { %2246 = vst.msk [vmem:[%s2972_s9 + $0x10] sm:$0xff] %vm1065_vm12, %v2242_v48  ;;  %v2168_v8 = vadd.f32 %v2167_v20, %v2126_v55 }
 0x3a0   :  { %v2204_v22 = vadd.f32 %v2203_v60, %v2168_v8 }
 0x3a2   :  { %v2238_v3 = vadd.f32 %v2237_v0, %v2204_v22 }
 0x3a4   :  { %v2243_v26 = vadd.f32 %v2238_v3, %v1996_v17 }
 0x3a6   :  { %2247 = vst.msk [vmem:[%s2972_s9 + $0x18] sm:$0xff] %vm1065_vm12, %v2243_v26 }
 0x3a7   :  { %2252 = vsyncpa [#allocation3], 1 }
 0x3a8   :  { %2253 = vsyncpa [#allocation5], 1 }
 0x3a9   :  { %2254 = vsyncpa [#allocation8], 1 }

</bundles_post_ra>
